<compile_context>
chip_gen: v6e
topology: v6e:2x2x1
jax: 0.10.0
libtpu: 0.0.40
codegen_flags: <defaults>
</compile_context>

<pallas_src>
import jax
import jax.numpy as jnp
from jax.experimental import pallas as pl
from jax.experimental.pallas import tpu as pltpu


def gcn_prompt_kernel(alpha_ref, h_ref, bias_ref, adj_ref, out_ref, acc_ref):
    k = pl.program_id(1)

    @pl.when(k == 0)
    def _():
        acc_ref[...] = jnp.zeros_like(acc_ref)

    # Partial graph aggregation for this (row tile, column tile):
    #   acc += adj[i_tile, k_tile] @ h[k_tile, :]
    acc_ref[...] += jnp.dot(adj_ref[...], h_ref[...],
                            preferred_element_type=jnp.float32)

    @pl.when(k == pl.num_programs(1) - 1)
    def _():
        o = acc_ref[...] + bias_ref[...]            # (TM, F_pad) f32
        alpha = alpha_ref[0, 0]                     # learned PReLU slope (SMEM)
        out_ref[...] = jnp.where(o > 0.0, o, alpha * o).astype(out_ref.dtype)


def _round_up(x, m):
    return ((x + m - 1) // m) * m


def gcn_prompt_forward(seq, adj, prompt, weight, bias, prelu_alpha, *,
                       tm=256, tk=512):
    """seq: (1, N, F_in), adj: (N, N) dense, prompt: (1, 1, F_in),
       weight: (F_out, F_in), bias: (F_out,), prelu_alpha: scalar."""
    _, n, f_in = seq.shape
    f_out = weight.shape[0]
    f_pad = _round_up(f_out, 128)                   # lane-dense output width

    # Clamp tiles for small graphs, keep (8, 128) divisibility.
    tm = _round_up(max(8, min(tm, _round_up(n, 8))), 8)
    tk = _round_up(max(128, min(tk, _round_up(n, 128))), 128)
    n_rows = _round_up(n, tm)                       # padded adjacency rows
    n_cols = _round_up(n, tk)                       # padded adjacency columns
    grid_m = n_rows // tm
    grid_k = n_cols // tk

    # --- wrapper-side prep (one-time per call) ---
    # Projection hoisted out of the kernel: h = (seq + prompt) @ W^T in f32,
    # zero-padded to (n_cols, f_pad), cast to bf16 for the MXU.
    x = seq[0].astype(jnp.float32) + prompt[0].astype(jnp.float32)   # (N, F_in)
    h = x @ weight.T.astype(jnp.float32)                             # (N, F_out)
    h_pad = (jnp.zeros((n_cols, f_pad), jnp.float32)
             .at[:n, :f_out].set(h).astype(jnp.bfloat16))

    adj_pad = (jnp.zeros((n_rows, n_cols), jnp.bfloat16)
               .at[:n, :n].set(adj.astype(jnp.bfloat16)))

    bias_pad = (jnp.zeros((1, f_pad), jnp.float32)
                .at[:, :f_out].set(bias.reshape(1, f_out).astype(jnp.float32)))

    alpha = jnp.asarray(prelu_alpha, jnp.float32).reshape(1, 1)       # SMEM

    cost = pl.CostEstimate(
        flops=2 * n_rows * n_cols * f_pad,
        transcendentals=0,
        bytes_accessed=(n_rows * n_cols * 2            # adj (bf16), streamed
                        + grid_m * n_cols * f_pad * 2  # h re-read per row tile
                        + n_rows * f_pad * 4           # out writeback (f32)
                        + f_pad * 4),
    )

    out_pad = pl.pallas_call(
        gcn_prompt_kernel,
        out_shape=jax.ShapeDtypeStruct((n_rows, f_pad), jnp.float32),
        grid=(grid_m, grid_k),
        in_specs=[
            pl.BlockSpec(memory_space=pltpu.MemorySpace.SMEM),      # alpha
            pl.BlockSpec((tk, f_pad), lambda i, k: (k, 0)),         # h tile
            pl.BlockSpec((1, f_pad), lambda i, k: (0, 0)),          # bias
            pl.BlockSpec((tm, tk), lambda i, k: (i, k)),            # adj tile
        ],
        out_specs=pl.BlockSpec((tm, f_pad), lambda i, k: (i, 0)),
        scratch_shapes=[pltpu.VMEM((tm, f_pad), jnp.float32)],      # accumulator
        compiler_params=pltpu.CompilerParams(
            dimension_semantics=("parallel", "arbitrary"),
            vmem_limit_bytes=48 * 1024 * 1024),
        cost_estimate=cost,
    )(alpha, h_pad, bias_pad, adj_pad)

    # Drop row/lane padding, restore the batch dim: (1, N, F_out).
    return out_pad[None, :n, :f_out]


def xavier_uniform(key, shape):
    # torch.nn.init.xavier_uniform_: fan_in = last dim, fan_out = second-last.
    fan_out, fan_in = shape[-2], shape[-1]
    limit = float(jnp.sqrt(6.0 / (fan_in + fan_out)))
    return jax.random.uniform(key, shape, jnp.float32, -limit, limit)


if __name__ == "__main__":
    # Small shapes consistent with the module.  N=640 with default tiles
    # exercises row padding (768 rows, 3 row tiles), column padding
    # (1024 cols, 2 k-steps) and the k-accumulator path.
    nb_nodes, in_ft, out_ft = 640, 32, 32

    key = jax.random.PRNGKey(0)
    k_seq, k_adj, k_w, k_p = jax.random.split(key, 4)

    # Parameters: xavier for fc weight & prompt, zero bias, PReLU slope 0.25
    # (nn.PReLU default).
    weight = xavier_uniform(k_w, (out_ft, in_ft))
    prompt = xavier_uniform(k_p, (1, 1, in_ft))
    bias = jnp.zeros((out_ft,), jnp.float32)
    prelu_alpha = 0.25

    # Inputs: random features + dense row-normalized adjacency with self-loops.
    seq = jax.random.normal(k_seq, (1, nb_nodes, in_ft), jnp.float32)
    adj_raw = (jax.random.uniform(k_adj, (nb_nodes, nb_nodes)) < 0.05
               ).astype(jnp.float32)
    adj_raw = adj_raw + jnp.eye(nb_nodes, dtype=jnp.float32)
    adj = adj_raw / jnp.sum(adj_raw, axis=1, keepdims=True)

    out = gcn_prompt_forward(seq, adj, prompt, weight, bias, prelu_alpha)
    out = jax.block_until_ready(out)

    # Pure-JAX f32 reference (kernel uses bf16 MXU operands -> loose tolerance).
    x = seq + prompt
    h = jnp.einsum("bnf,of->bno", x, weight)
    ref = jnp.einsum("nm,bmo->bno", adj, h) + bias
    ref = jnp.where(ref > 0, ref, prelu_alpha * ref)

    assert out.shape == (1, nb_nodes, out_ft)
    assert jnp.allclose(out, ref, atol=5e-2, rtol=5e-2), (
        float(jnp.max(jnp.abs(out - ref))))

    print("KERNEL_OK")
</pallas_src>

<mosaic_0001>
module attributes {stable_mosaic.version = 11 : i64} {
  func.func @gcn_prompt_kernel(%arg0: i32, %arg1: i32, %arg2: memref<1x1xf32, #tpu.memory_space<smem>>, %arg3: memref<512x128xbf16, #tpu.memory_space<vmem>>, %arg4: memref<1x128xf32, #tpu.memory_space<vmem>>, %arg5: memref<256x512xbf16, #tpu.memory_space<vmem>>, %arg6: memref<256x128xf32, #tpu.memory_space<vmem>>, %arg7: memref<256x128xf32, #tpu.memory_space<vmem>>) attributes {dimension_semantics = [#tpu.dimension_semantics<parallel>, #tpu.dimension_semantics<arbitrary>], iteration_bounds = array<i64: 3, 2>, scalar_prefetch = 0 : i64, scratch_operands = 1 : i64, tpu.core_type = #tpu.core_type<tc>, window_params = [{transform_indices = @transform_0, window_bounds = array<i64: 1, 1>}, {transform_indices = @transform_1, window_bounds = array<i64: 512, 128>}, {pipeline_mode = #tpu.pipeline_mode<synchronous>, transform_indices = @transform_2, window_bounds = array<i64: 1, 128>}, {transform_indices = @transform_3, window_bounds = array<i64: 256, 512>}, {transform_indices = @transform_4, window_bounds = array<i64: 256, 128>}]} {
    %c0_i32 = arith.constant 0 : i32
    %0 = arith.cmpi eq, %arg1, %c0_i32 : i32
    %1 = arith.extui %0 : i1 to i32
    %c0_i32_0 = arith.constant 0 : i32
    %2 = arith.cmpi ne, %1, %c0_i32_0 : i32
    scf.if %2 {
      %cst_9 = arith.constant 0.000000e+00 : f32
      %12 = vector.broadcast %cst_9 : f32 to vector<256x128xf32>
      %c0_10 = arith.constant 0 : index
      %c0_11 = arith.constant 0 : index
      %13 = vector.load %arg7[%c0_10, %c0_11] : memref<256x128xf32, #tpu.memory_space<vmem>>, vector<256x128xf32>
      tpu.vector_store %arg7[%c0_10, %c0_11], %12 {strides = array<i32>} : memref<256x128xf32, #tpu.memory_space<vmem>>, vector<256x128xf32>,
    } else {
    }
    %c0 = arith.constant 0 : index
    %c0_1 = arith.constant 0 : index
    %3 = vector.load %arg7[%c0, %c0_1] : memref<256x128xf32, #tpu.memory_space<vmem>>, vector<256x128xf32>
    %c0_2 = arith.constant 0 : index
    %c0_3 = arith.constant 0 : index
    %4 = vector.load %arg5[%c0_2, %c0_3] : memref<256x512xbf16, #tpu.memory_space<vmem>>, vector<256x512xbf16>
    %c0_4 = arith.constant 0 : index
    %c0_5 = arith.constant 0 : index
    %5 = vector.load %arg3[%c0_4, %c0_5] : memref<512x128xbf16, #tpu.memory_space<vmem>>, vector<512x128xbf16>
    %cst = arith.constant dense<0.000000e+00> : vector<256x128xf32>
    %6 = tpu.matmul %4, %5, %cst {dimension_numbers = #tpu.dot_dimension_numbers<[1], [0], [0], [1], [0, 0, 1, 1], [], []>} : vector<256x512xbf16>, vector<512x128xbf16>, vector<256x128xf32> -> vector<256x128xf32>
    %7 = arith.addf %3, %6 : vector<256x128xf32>
    %c0_6 = arith.constant 0 : index
    %c0_7 = arith.constant 0 : index
    %8 = vector.load %arg7[%c0_6, %c0_7] : memref<256x128xf32, #tpu.memory_space<vmem>>, vector<256x128xf32>
    tpu.vector_store %arg7[%c0_6, %c0_7], %7 {strides = array<i32>} : memref<256x128xf32, #tpu.memory_space<vmem>>, vector<256x128xf32>,
    %c1_i32 = arith.constant 1 : i32
    %9 = arith.cmpi eq, %arg1, %c1_i32 : i32
    %10 = arith.extui %9 : i1 to i32
    %c0_i32_8 = arith.constant 0 : i32
    %11 = arith.cmpi ne, %10, %c0_i32_8 : i32
    scf.if %11 {
      %c0_9 = arith.constant 0 : index
      %c0_10 = arith.constant 0 : index
      %12 = vector.load %arg7[%c0_9, %c0_10] : memref<256x128xf32, #tpu.memory_space<vmem>>, vector<256x128xf32>
      %c0_11 = arith.constant 0 : index
      %c0_12 = arith.constant 0 : index
      %13 = vector.load %arg4[%c0_11, %c0_12] : memref<1x128xf32, #tpu.memory_space<vmem>>, vector<1x128xf32>
      %14 = vector.broadcast %13 : vector<1x128xf32> to vector<256x128xf32>
      %15 = arith.addf %12, %14 : vector<256x128xf32>
      %c0_13 = arith.constant 0 : index
      %c0_14 = arith.constant 0 : index
      %16 = memref.load %arg2[%c0_13, %c0_14] : memref<1x1xf32, #tpu.memory_space<smem>>
      %cst_15 = arith.constant 0.000000e+00 : f32
      %17 = vector.broadcast %cst_15 : f32 to vector<256x128xf32>
      %18 = arith.cmpf ogt, %15, %17 : vector<256x128xf32>
      %19 = vector.broadcast %16 : f32 to vector<256x128xf32>
      %20 = arith.mulf %19, %15 : vector<256x128xf32>
      %21 = arith.select %18, %15, %20 : vector<256x128xi1>, vector<256x128xf32>
      %c0_16 = arith.constant 0 : index
      %c0_17 = arith.constant 0 : index
      %22 = vector.load %arg6[%c0_16, %c0_17] : memref<256x128xf32, #tpu.memory_space<vmem>>, vector<256x128xf32>
      tpu.vector_store %arg6[%c0_16, %c0_17], %21 {strides = array<i32>} : memref<256x128xf32, #tpu.memory_space<vmem>>, vector<256x128xf32>,
    } else {
    }
    return
  }
  func.func @transform_0(%arg0: i32, %arg1: i32) -> (i32, i32) {
    %c0_i32 = arith.constant 0 : i32
    %c0_i32_0 = arith.constant 0 : i32
    %c0_i32_1 = arith.constant 0 : i32
    return %c0_i32, %c0_i32_0 : i32, i32
  }
  func.func @transform_1(%arg0: i32, %arg1: i32) -> (i32, i32) {
    %c0_i32 = arith.constant 0 : i32
    %c0_i32_0 = arith.constant 0 : i32
    return %arg1, %c0_i32 : i32, i32
  }
  func.func @transform_2(%arg0: i32, %arg1: i32) -> (i32, i32) {
    %c0_i32 = arith.constant 0 : i32
    %c0_i32_0 = arith.constant 0 : i32
    %c0_i32_1 = arith.constant 0 : i32
    return %c0_i32, %c0_i32_0 : i32, i32
  }
  func.func @transform_3(%arg0: i32, %arg1: i32) -> (i32, i32) {
    %c0_i32 = arith.constant 0 : i32
    return %arg0, %arg1 : i32, i32
  }
  func.func @transform_4(%arg0: i32, %arg1: i32) -> (i32, i32) {
    %c0_i32 = arith.constant 0 : i32
    %c0_i32_0 = arith.constant 0 : i32
    return %arg0, %c0_i32 : i32, i32
  }
}

</mosaic_0001>

<bundles_post_ra>
// kernel: tpu_custom_call.1
= control target key start
LH: loop header
LB: loop body
LE: loop exit
PB: predicated region body
PF: predicated region fallthrough
CT: control target
= control target key end

     0   :  { %s3160_s0 = inlined_call_operand.<no memory space> [shape: f32[1,1], index: 0, kind: input, shape index: {}]   ;;  %s3161_s1 = inlined_call_operand.hbm [shape: bf16[1024,128], index: 1, kind: input, shape index: {}]   ;;  %s3162_s2 = inlined_call_operand.hbm [shape: f32[1,128], index: 2, kind: input, shape index: {}]   ;;  %s3163_s3 = inlined_call_operand.hbm [shape: bf16[768,1024], index: 3, kind: input, shape index: {}]   ;;  %s3164_s4 = inlined_call_operand.hbm [shape: f32[768,128], index: 4, kind: output, shape index: {}]  }
   0x1   :  { %3175 = sst [smem:[#allocation25_spill]] %s3161_s1 }
   0x2   :  { %3176 = sst [smem:[#allocation26_spill]] %s3164_s4 }
   0x3   :  { %9 = sst [smem:[#allocation3]] %s3160_s0 }
   0x4   :  { %10 = vsyncpa [#allocation5], 0 }
   0x5   :  { %12 = vsyncpa [#allocation5 + $0x1], 0 }
   0x6   :  { %13 = vsyncpa [#allocation8], 0 }
   0x7   :  { %14 = vsyncpa [#allocation6], 0 }
   0x8   :  { %16 = vsyncpa [#allocation6 + $0x1], 0  ;;  %s2622_s17 = smov 0   ;;  %s2624_s18 = smov 0  }
   0x9   :  { %s2626_s19 = smov 0   ;;  %s2628_s20 = smov 0  }
   0xa   :  { %s2630_s21 = smov 0   ;;  %s2632_s22 = smov 0  }
   0xb   :  { %s2634_s23 = smov 0   ;;  %s2636_s0 = smov 0  }
   0xc   :  { %s2638_s24 = smov 0   ;;  %s2640_s25 = smov 0  }
   0xd   :  { %s2642_s26 = smov 0   ;;  %s2644_s27 = smov 0  }
   0xe   :  { %s2646_s28 = smov 0   ;;  %s2648_s29 = smov 0  }
   0xf LB: > { %3177 = sst [smem:[#allocation15_spill]] %s2548_s22  ;;  %s31_s30 = sadd.s32 1, %s2572_s27  ;;  %s2580_s29 = sphi %s2648_s29, %s22_s29   ;;  %s2576_s28 = sphi %s2646_s28, %s3217_s28   ;;  %s2572_s27 = sphi %s2644_s27, %s3216_s27   ;;  %s2568_s26 = sphi %s2642_s26, %s3215_s26   ;;  %s2564_s25 = sphi %s2640_s25, %s3214_s25   ;;  %s2560_s24 = sphi %s2638_s24, %s3226_s24   ;;  %s2556_s0 = sphi %s2636_s0, %s3225_s0   ;;  %s2552_s23 = sphi %s2634_s23, %s3224_s23   ;;  %s2548_s22 = sphi %s2632_s22, %s3211_s22   ;;  %s2544_s21 = sphi %s2630_s21, %s3223_s21   ;;  %s2540_s20 = sphi %s2628_s20, %s3222_s20   ;;  %s2536_s19 = sphi %s2626_s19, %s3221_s19   ;;  %s2532_s18 = sphi %s2624_s18, %s3220_s18   ;;  %s2528_s17 = sphi %s2622_s17, %s3219_s17  }
  0x10   : > { %3178 = sst [smem:[#allocation16_spill]] %s2560_s24  ;;  %s34_s5 = sadd.s32 1, %s2576_s28 }
  0x11   : > { %3179 = sst [smem:[#allocation17_spill]] %s2568_s26  ;;  %p32_p0 = scmp.ge.s32.totalorder %s31_s30, 2 }
  0x12   : > { %3180 = sst [smem:[#allocation18_spill]] %s2572_s27  ;;  %s62_s6 = sadd.s32 1, %s2560_s24 }
  0x13   : > { %3181 = sst [smem:[#allocation19_spill]] %s2576_s28  ;;  %p69_p1 = scmp.ne.s32.totalorder %s2560_s24, %s2556_s0 }
  0x14   : > { %p70_p2 = scmp.eq.s32.totalorder %s2580_s29, 0  ;;  %s3228_s30 = smov (%p32_p0, %s31_s30), 0 }
  0x15   : > { %3182 = sst [smem:[#allocation20_spill]] %s3228_s30  ;;  %s3230_s5 = smov (!%p32_p0, %s34_s5), %s2576_s28 }
  0x16   : > { %s59_s7 = ssub.s32 %s2572_s27, %s3228_s30  ;;  %p2705_p3 = por %p70_p2, %p69_p1 }
  0x17   : > { %p36_p4 = scmp.ge.s32.totalorder %s3230_s5, 3  ;;  %p60_p5 = scmp.eq.s32.totalorder %s59_s7, 0 }
  0x18   : > { %p2094_p6 = scmp.lt.s32.totalorder %s2580_s29, 6  ;;  %s188_s11 = sand.u32 1, %s2580_s29  }
  0x19   : > { %s3232_s5 = smov (%p36_p4, %s3230_s5), 0  ;;  %s190_s14 = sand.u32 1, %s2560_s24  }
  0x1a   : > { %3184 = sst [smem:[#allocation21_spill]] %s3232_s5  ;;  %s2717_s10 = ssub.s32 %s2576_s28, %s3232_s5 }
  0x1b   : > { %s2713_s9 = scalar_select %p60_p5, %s2560_s24, %s62_s6  }
  0x1c   : > { %s108_s12 = sor.u32 %s2717_s10, %s59_s7  ;;  %p135_p7 = scmp.eq.s32.totalorder %s2717_s10, 0 }
  0x1d   : > { %3185 = sst [smem:[#allocation22_spill]] %s2713_s9  ;;  %p2722_p8 = scmp.eq.s32.totalorder %s108_s12, 0 }
  0x1e   : > { %s1841_s15 = sshll.u32 %s2572_s27, 12  ;;  %s1724_s16 = sshll.u32 %s190_s14, 8 }
  0x1f   : > { %s3187_s1 = sld [smem:[#allocation25_spill]]  ;;  %p2735_p9 = pnand %p2094_p6, %p2705_p3 }
  0x20   : > { %s192_s7 = scalar_lea.vmem [#allocation4], %s1724_s16  ;;  %s2740_s9 = scalar_lea.sflag [#allocation5], %s188_s11 }
  0x21   : > { %s199_s5 = sshll.u32 %s192_s7, 4  ;;  %p2348_p10 = pneg %p2735_p9  ;;  %s200_s5 = int_to_ptr.vmem [resolvable:$true] %s199_s5 }
  0x22   : > { %s2359_s14 = scalar_lea.vmem %s200_s5, 4096  ;;  %s2582_s4 = smov [#allocation4]  }
  0x23   : > { %p2360_p11 = scmp.ne.s32.totalorder %s200_s5, %s2359_s14  ;;  %s2364_s30 = sshll.u32 %s2582_s4, 4  ;;  %s2365_s30 = int_to_ptr.vmem [resolvable:$false] %s2364_s30 }
  0x24   : > { %s2366_s8 = scalar_lea.vmem %s2365_s30, 8192  ;;  %p2367_p0 = scmp.lt.s32.totalorder %s200_s5, %s2365_s30 }
  0x25   : > { %s198_s26 = scalar_lea.hbm %s3187_s1, %s1841_s15  ;;  %p2362_p12 = pnand %p2360_p11, %p2348_p10 }
  0x26   : > { %p2368_p1 = scmp.lt.s32.totalorder %s2366_s8, %s2359_s14 }
  0x27   : > { %p2363_p13 = pneg %p2362_p12 }
  0x28   : > { %p2369_p3 = por %p2368_p1, %p2367_p0 }
  0x2a   : > { %p2370_p4 = pnand %p2369_p3, %p2363_p13 }
  0x2c   : > { %2373 = shalt.err (!%p2370_p4)
}
  0x2d   : > { %s2583_s15 = smov 64   ;;  %s2584_s11 = smov 4  }
  0x2e   : > { %2085 = dma.hbm_to_vmem [thread:$0]  (!%p2735_p9), %s198_s26, 4096, %s200_s5, %s2740_s9, %s2583_s15, %s2583_s15, %s2584_s11  }
  0x2f   : > { %s2748_s16 = sadd.s32 4294967295, %s2580_s29   ;;  %s1720_s7 = sadd.s32 4294967294, %s2580_s29  }
  0x30   : > { %p75_p5 = scmp.ne.s32.totalorder %s2556_s0, %s2552_s23  ;;  %p3168_p10 = scmp.eq.s32.totalorder %s2748_s16, 0 }
  0x31   : > { %s111_s14 = sadd.s32 1, %s2548_s22  ;;  %p118_p11 = scmp.ne.s32.totalorder %s2548_s22, %s2544_s21 }
  0x32   : > { %p2759_p12 = por %p3168_p10, %p75_p5  ;;  %p124_p9 = scmp.ne.s32.totalorder %s2544_s21, %s2540_s20 }
  0x33   : > { %s2768_s26 = scalar_select %p2722_p8, %s2548_s22, %s111_s14  }
  0x34   : > { %p2772_p13 = por %p118_p11, %p70_p2  ;;  %p2778_p0 = por %p124_p9, %p3168_p10 }
  0x35   : > { %3190 = sst [smem:[#allocation23_spill]] %s2768_s26  ;;  %s137_s6 = sadd.s32 1, %s2536_s19 }
  0x36   : > { %s3192_s23 = scalar_select %p2778_p0, 1, 0 }
  0x37   : > { %p147_p1 = scmp.ne.s32.totalorder %s2536_s19, %s2532_s18  ;;  %p148_p8 = scmp.eq.s32.totalorder %s2748_s16, 5 }
  0x38   : > { %s2788_s20 = scalar_select %p135_p7, %s2536_s19, %s137_s6  }
  0x39   : > { %p153_p3 = scmp.ne.s32.totalorder %s2532_s18, %s2528_s17  ;;  %p154_p2 = scmp.eq.s32.totalorder %s1720_s7, 5 }
  0x3a   : > { %3193 = sst [smem:[#allocation24_spill]] %s2788_s20  ;;  %p1721_p4 = scmp.ge.s32.totalorder %s2580_s29, 1 }
  0x3b   : > { %p2794_p5 = por %p148_p8, %p147_p1  ;;  %p161_p11 = scmp.lt.s32.totalorder %s2580_s29, 7 }
  0x3c   : > { %p2799_p9 = por %p154_p2, %p153_p3  ;;  %s2585_s8 = smov [#allocation7]  }
  0x3d   : > { %s3194_s13 = scalar_select %p2794_p5, 1, 0 }
  0x3e   : > { %s3195_s30 = scalar_select %p2799_p9, 1, 0 }
  0x3f   : > { %p2803_p10 = pnand %p1721_p4, %p161_p11  ;;  %s177_s15 = sshll.u32 %s2585_s8, 4  ;;  %s178_s15 = int_to_ptr.vmem [resolvable:$true] %s177_s15 }
  0x40   : > { %p2811_p7 = pnand %p2094_p6, %p2772_p13  ;;  %s211_s7 = sand.u32 1, %s2548_s22  }
  0x41   : > { %p2078_p1 = pneg %p2803_p10  ;;  %p3198_p8 = scmp.eq.s32.totalorder %s2748_s16, 0 }
  0x42   : > { %s1727_s6 = sshll.u32 %s211_s7, 9  ;;  %s1842_s12 = sshll.u32 %s2576_s28, 8 }
  0x43   : > { %p2820_p3 = pnand %p2078_p1, %p3198_p8  ;;  %s3200_s1 = sshll.u32 %s2572_s27, 2 }
  0x44   : > { %s220_s8 = sadd.s32 %s1842_s12, %s3200_s1  ;;  %s2385_s5 = scalar_lea.vmem %s178_s15, 16 }
  0x45   : > { %p2376_p2 = pneg %p2820_p3  ;;  %p2386_p6 = scmp.ne.s32.totalorder %s178_s15, %s2385_s5 }
  0x46   : > { %s2392_s24 = scalar_lea.vmem %s178_s15, 32  ;;  %p2393_p11 = scmp.lt.s32.totalorder %s178_s15, %s178_s15 }
  0x47   : > { %p2388_p13 = pnand %p2386_p6, %p2376_p2  ;;  %p2394_p9 = scmp.lt.s32.totalorder %s2392_s24, %s2385_s5 }
  0x49   : > { %p2389_p4 = pneg %p2388_p13  ;;  %p2395_p5 = por %p2394_p9, %p2393_p11 }
  0x4b   : > { %p2396_p0 = pnand %p2395_p5, %p2389_p4 }
  0x4d   : > { %2399 = shalt.err (!%p2396_p0)
}
  0x4e   : > { %2081 = dma.hbm_to_vmem [thread:$0]  (!%p2820_p3), %s3162_s2, 16, %s178_s15, [#allocation8]  }
  0x4f   : > { %s1731_s1 = sshll.u32 %s220_s8, 6  ;;  %s213_s12 = scalar_lea.vmem [#allocation9], %s1727_s6 }
  0x50   : > { %s223_s7 = sshll.u32 %s213_s12, 4  ;;  %s222_s20 = scalar_lea.hbm %s3163_s3, %s1731_s1  ;;  %s224_s7 = int_to_ptr.vmem [resolvable:$true] %s223_s7 }
  0x51   : > { %p2402_p1 = pneg %p2811_p7  ;;  %s2413_s24 = scalar_lea.vmem %s224_s7, 8192 }
  0x52   : > { %p2414_p5 = scmp.ne.s32.totalorder %s224_s7, %s2413_s24  ;;  %s2586_s14 = smov [#allocation9]  }
  0x53   : > { %s2418_s5 = sshll.u32 %s2586_s14, 4  ;;  %s2419_s5 = int_to_ptr.vmem [resolvable:$false] %s2418_s5 }
  0x54   : > { %p2416_p0 = pnand %p2414_p5, %p2402_p1  ;;  %s2420_s22 = scalar_lea.vmem %s2419_s5, 16384 }
  0x55   : > { %p2421_p8 = scmp.lt.s32.totalorder %s224_s7, %s2419_s5  ;;  %p2422_p3 = scmp.lt.s32.totalorder %s2420_s22, %s2413_s24 }
  0x56   : > { %p2417_p9 = pneg %p2416_p0 }
  0x57   : > { %p2423_p2 = por %p2422_p3, %p2421_p8 }
  0x59   : > { %p2424_p6 = pnand %p2423_p2, %p2417_p9 }
  0x5b   : > { %2427 = shalt.err (!%p2424_p6)
}
  0x5c   : > { %s2587_s26 = smov 512   ;;  %s2588_s27 = smov 256  }
  0x5d   : > { %s2589_s28 = smov 16   ;;  %235 = sbr.rel (%p2803_p10) target bundleno = 554 (0x22a), region = 36 }
  0x5e   : > { %2088 = dma.hbm_to_vmem [thread:$0]  (!%p2811_p7), %s222_s20, 8192, %s224_s7, %s2740_s9, %s2587_s26, %s2588_s27, %s2589_s28  }
  0x5f   : > { %s237_s15 = sand.u32 (!%p2803_p10), 1, %s2748_s16   ;;  %s239_s6 = sand.u32 (!%p2803_p10), 1, %s2556_s0  }
  0x60   : > { %s1733_s8 = sshll.u32 (!%p2803_p10), %s239_s6, 8  ;;  %s238_s1 = scalar_lea.sflag (!%p2803_p10), [#allocation5], %s237_s15 }
  0x61   : > { %s2846_s12 = scalar_lea.vmem (!%p2803_p10), [#allocation4], %s1733_s8 }
  0x62   : > { %2511 = dma.done.wait (%p2759_p12), %s238_s1, 4096  }
  0x63   : > { %2513 = vsyncadd (%p2759_p12), %s238_s1, 4294963200  ;;  %p3201_p13 = scmp.eq.s32.totalorder %s2748_s16, 0 }
  0x65   : > { %2515 = dma.done.wait (%p3201_p13), [#allocation8], 16   ;;  %p3202_p7 = pmov %p3201_p13 }
  0x66   : > { %s252_s9 = sand.u32 1, %s2544_s21   ;;  %p3203_p10 = scmp.ne.s32.totalorder %s3192_s23, 0 }
  0x67   : > { %2517 = vsyncadd (%p3202_p7), [#allocation8], 4294967280  ;;  %s1735_s20 = sshll.u32 %s252_s9, 9 }
  0x68   : > { %s2857_s10 = scalar_lea.vmem [#allocation9], %s1735_s20 }
  0x69   : > { %2519 = dma.done.wait (%p3203_p10), %s238_s1, 8192  }
  0x6a   : > { %2521 = vsyncadd (%p3203_p10), %s238_s1, 4294959104  ;;  %s281_s4 = sand.u32 1, %s2532_s18   ;;  %p1737_p12 = scmp.ne.s32.totalorder %s2564_s25, 0 }
  0x6b   : > { %s1736_s11 = sshll.u32 %s281_s4, 8 }
  0x6c   : > { %s2866_s7 = scalar_lea.vmem [#allocation10], %s1736_s11  ;;  %292 = sbr.rel (%p1737_p12) target bundleno = 130 (0x82), region = 52 }
  0x71   : > { %v2590_v0 = vmov 0.0  }
  0x72   : > { %293 = vst [vmem:[#allocation2 + $0xb0] sm:$0xff] %v2590_v0  ;;  %294 = vst [vmem:[#allocation2] sm:$0xff] %v2590_v0 }
  0x73   : > { %295 = vst [vmem:[#allocation2 + $0xd8] sm:$0xff] %v2590_v0  ;;  %296 = vst [vmem:[#allocation2 + $0x18] sm:$0xff] %v2590_v0 }
  0x74   : > { %297 = vst [vmem:[#allocation2 + $0x50] sm:$0xff] %v2590_v0  ;;  %298 = vst [vmem:[#allocation2 + $0x68] sm:$0xff] %v2590_v0 }
  0x75   : > { %299 = vst [vmem:[#allocation2 + $0x30] sm:$0xff] %v2590_v0  ;;  %300 = vst [vmem:[#allocation2 + $0x48] sm:$0xff] %v2590_v0 }
  0x76   : > { %301 = vst [vmem:[#allocation2 + $0x80] sm:$0xff] %v2590_v0  ;;  %302 = vst [vmem:[#allocation2 + $0x88] sm:$0xff] %v2590_v0 }
  0x77   : > { %303 = vst [vmem:[#allocation2 + $0xe8] sm:$0xff] %v2590_v0  ;;  %304 = vst [vmem:[#allocation2 + $0xb8] sm:$0xff] %v2590_v0 }
  0x78   : > { %305 = vst [vmem:[#allocation2 + $0x60] sm:$0xff] %v2590_v0  ;;  %306 = vst [vmem:[#allocation2 + $0xf0] sm:$0xff] %v2590_v0 }
  0x79   : > { %307 = vst [vmem:[#allocation2 + $0x8] sm:$0xff] %v2590_v0  ;;  %308 = vst [vmem:[#allocation2 + $0x78] sm:$0xff] %v2590_v0 }
  0x7a   : > { %309 = vst [vmem:[#allocation2 + $0x38] sm:$0xff] %v2590_v0  ;;  %310 = vst [vmem:[#allocation2 + $0x58] sm:$0xff] %v2590_v0 }
  0x7b   : > { %311 = vst [vmem:[#allocation2 + $0x40] sm:$0xff] %v2590_v0  ;;  %312 = vst [vmem:[#allocation2 + $0xc8] sm:$0xff] %v2590_v0 }
  0x7c   : > { %313 = vst [vmem:[#allocation2 + $0xe0] sm:$0xff] %v2590_v0  ;;  %314 = vst [vmem:[#allocation2 + $0x90] sm:$0xff] %v2590_v0 }
  0x7d   : > { %315 = vst [vmem:[#allocation2 + $0x70] sm:$0xff] %v2590_v0  ;;  %316 = vst [vmem:[#allocation2 + $0xc0] sm:$0xff] %v2590_v0 }
  0x7e   : > { %317 = vst [vmem:[#allocation2 + $0xa8] sm:$0xff] %v2590_v0  ;;  %318 = vst [vmem:[#allocation2 + $0xd0] sm:$0xff] %v2590_v0 }
  0x7f   : > { %319 = vst [vmem:[#allocation2 + $0x10] sm:$0xff] %v2590_v0  ;;  %320 = vst [vmem:[#allocation2 + $0x28] sm:$0xff] %v2590_v0 }
  0x80   : > { %321 = vst [vmem:[#allocation2 + $0xa0] sm:$0xff] %v2590_v0  ;;  %322 = vst [vmem:[#allocation2 + $0xf8] sm:$0xff] %v2590_v0 }
  0x81   : > { %323 = vst [vmem:[#allocation2 + $0x20] sm:$0xff] %v2590_v0  ;;  %324 = vst [vmem:[#allocation2 + $0x98] sm:$0xff] %v2590_v0 }
  0x82 PF: > { %v2218_v1 = vld [vmem:[%s2846_s12 + $0x78] sm:$0xff]   ;;  %v2222_v5 = vld [vmem:[%s2846_s12 + $0x70] sm:$0xff]   ;;  %v2226_v9 = vld [vmem:[%s2846_s12 + $0x68] sm:$0xff]   ;;  %p1834_p4 = scmp.ne.s32.totalorder %s2564_s25, 1 }
  0x83   : > { %v2219_v2 = vld [vmem:[%s2846_s12 + $0xf8] sm:$0xff]   ;;  %1844 = vmatprep.subr.bf16.mxu0 %v2218_v1  ;;  %v2223_v6 = vld [vmem:[%s2846_s12 + $0xf0] sm:$0xff]   ;;  %v2227_v10 = vld [vmem:[%s2846_s12 + $0xe8] sm:$0xff]   ;;  %s1458_s16 = sld [smem:[#allocation3]] (!%p1834_p4) }
  0x84   : > { %v2220_v3 = vld [vmem:[%s2846_s12 + $0x38] sm:$0xff]   ;;  %1956 = vmatprep.subr.bf16.mxu1 %v2219_v2  ;;  %v2224_v7 = vld [vmem:[%s2846_s12 + $0x30] sm:$0xff]   ;;  %v2228_v11 = vld [vmem:[%s2846_s12 + $0x28] sm:$0xff]  }
  0x85   : > { %v2221_v4 = vld [vmem:[%s2846_s12 + $0xb8] sm:$0xff]   ;;  %1845 = vmatpush3.bf16.msra.mxu0 %v2220_v3  ;;  %v2225_v8 = vld [vmem:[%s2846_s12 + $0xb0] sm:$0xff]   ;;  %v2229_v12 = vld [vmem:[%s2846_s12 + $0xa8] sm:$0xff]  }
  0x86   : > { %1957 = vmatpush3.bf16.msra.mxu1 %v2221_v4  ;;  %1846 = vmatprep.subr.bf16.mxu0 %v2222_v5  ;;  %v2230_v13 = vld [vmem:[%s2846_s12 + $0x60] sm:$0xff]   ;;  %v2234_v17 = vld [vmem:[%s2846_s12 + $0x58] sm:$0xff]   ;;  %v2238_v21 = vld [vmem:[%s2846_s12 + $0x50] sm:$0xff]  }
  0x87   : > { %1958 = vmatprep.subr.bf16.mxu1 %v2223_v6  ;;  %v2231_v14 = vld [vmem:[%s2846_s12 + $0xe0] sm:$0xff]   ;;  %v2235_v18 = vld [vmem:[%s2846_s12 + $0xd8] sm:$0xff]   ;;  %v2239_v22 = vld [vmem:[%s2846_s12 + $0xd0] sm:$0xff]  }
  0x88   : > { %v2232_v15 = vld [vmem:[%s2846_s12 + $0x20] sm:$0xff]   ;;  %v2236_v19 = vld [vmem:[%s2846_s12 + $0x18] sm:$0xff]   ;;  %v2240_v23 = vld [vmem:[%s2846_s12 + $0x10] sm:$0xff]  }
  0x89   : > { %1847 = vmatpush3.bf16.msra.mxu0 %v2224_v7  ;;  %v2233_v16 = vld [vmem:[%s2846_s12 + $0xa0] sm:$0xff]   ;;  %v2237_v20 = vld [vmem:[%s2846_s12 + $0x98] sm:$0xff]   ;;  %v2241_v24 = vld [vmem:[%s2846_s12 + $0x90] sm:$0xff]  }
  0x8a   : > { %1959 = vmatpush3.bf16.msra.mxu1 %v2225_v8  ;;  %1848 = vmatprep.subr.bf16.mxu0 %v2226_v9  ;;  %v2242_v25 = vld [vmem:[%s2846_s12 + $0x48] sm:$0xff]   ;;  %v2246_v29 = vld [vmem:[%s2846_s12 + $0x40] sm:$0xff]  }
  0x8b   : > { %1960 = vmatprep.subr.bf16.mxu1 %v2227_v10  ;;  %v2243_v26 = vld [vmem:[%s2846_s12 + $0xc8] sm:$0xff]   ;;  %v2247_v30 = vld [vmem:[%s2846_s12 + $0xc0] sm:$0xff]  }
  0x8c   : > { %v2244_v27 = vld [vmem:[%s2846_s12 + $0x8] sm:$0xff]   ;;  %v2248_v31 = vld [vmem:[%s2846_s12] sm:$0xff]  }
  0x8d   : > { %1849 = vmatpush3.bf16.msra.mxu0 %v2228_v11  ;;  %v2245_v28 = vld [vmem:[%s2846_s12 + $0x88] sm:$0xff]   ;;  %v2249_v32 = vld [vmem:[%s2846_s12 + $0x80] sm:$0xff]  }
  0x8e   : > { %1961 = vmatpush3.bf16.msra.mxu1 %v2229_v12  ;;  %1850 = vmatprep.subr.bf16.mxu0 %v2230_v13  ;;  %v2250_v33 = vld [vmem:[%s2857_s10] ss:$16 sps:$4 sm:$0xff]   ;;  %v2252_v34 = vld [vmem:[%s2857_s10 + $0x4] ss:$16 sps:$4 sm:$0xff]   ;;  %v2253_v35 = vld [vmem:[%s2857_s10 + $0x8] ss:$16 sps:$4 sm:$0xff]  }
  0x8f   : > { %1962 = vmatprep.subr.bf16.mxu1 %v2231_v14  ;;  %v2255_v36 = vld [vmem:[%s2857_s10 + $0xc] ss:$16 sps:$4 sm:$0xff]   ;;  %1029 = vmatprep.mubr.bf16.mxu0 %v2252_v34  ;;  %v2256_v37 = vld [vmem:[%s2857_s10 + $0x24] ss:$16 sps:$4 sm:$0xff]   ;;  %v2260_v39 = vld [vmem:[%s2857_s10 + $0x20] ss:$16 sps:$4 sm:$0xff]  }
  0x90   : > { %1190 = vmatprep.mubr.bf16.mxu1 %v2255_v36  ;;  %v2258_v38 = vld [vmem:[%s2857_s10 + $0x2c] ss:$16 sps:$4 sm:$0xff]   ;;  %v2261_v40 = vld [vmem:[%s2857_s10 + $0x28] ss:$16 sps:$4 sm:$0xff]   ;;  %v2262_v41 = vld [vmem:[%s2857_s10 + $0x44] ss:$16 sps:$4 sm:$0xff]  }
  0x91   : > { %1851 = vmatpush3.bf16.msra.mxu0 %v2232_v15  ;;  %v2264_v42 = vld [vmem:[%s2857_s10 + $0x4c] ss:$16 sps:$4 sm:$0xff]   ;;  %v2266_v43 = vld [vmem:[%s2857_s10 + $0x40] ss:$16 sps:$4 sm:$0xff]   ;;  %v2267_v44 = vld [vmem:[%s2857_s10 + $0x48] ss:$16 sps:$4 sm:$0xff]  }
  0x92   : > { %1963 = vmatpush3.bf16.msra.mxu1 %v2233_v16  ;;  %1852 = vmatprep.subr.bf16.mxu0 %v2234_v17  ;;  %v2268_v45 = vld [vmem:[%s2857_s10 + $0x64] ss:$16 sps:$4 sm:$0xff]   ;;  %v2270_v46 = vld [vmem:[%s2857_s10 + $0x6c] ss:$16 sps:$4 sm:$0xff]   ;;  %v2272_v47 = vld [vmem:[%s2857_s10 + $0x60] ss:$16 sps:$4 sm:$0xff]  }
  0x93   : > { %1964 = vmatprep.subr.bf16.mxu1 %v2235_v18  ;;  %v2273_v48 = vld [vmem:[%s2857_s10 + $0x68] ss:$16 sps:$4 sm:$0xff]   ;;  %v2274_v49 = vld [vmem:[%s2857_s10 + $0x84] ss:$16 sps:$4 sm:$0xff]   ;;  %v2276_v50 = vld [vmem:[%s2857_s10 + $0x8c] ss:$16 sps:$4 sm:$0xff]  }
  0x94   : > { %v2278_v51 = vld [vmem:[%s2857_s10 + $0x80] ss:$16 sps:$4 sm:$0xff]   ;;  %v2279_v52 = vld [vmem:[%s2857_s10 + $0x88] ss:$16 sps:$4 sm:$0xff]   ;;  %v2280_v53 = vld [vmem:[%s2857_s10 + $0xa4] ss:$16 sps:$4 sm:$0xff]  }
  0x95   : > { %1853 = vmatpush3.bf16.msra.mxu0 %v2236_v19  ;;  %v2282_v54 = vld [vmem:[%s2857_s10 + $0xac] ss:$16 sps:$4 sm:$0xff]   ;;  %v2284_v55 = vld [vmem:[%s2857_s10 + $0xa0] ss:$16 sps:$4 sm:$0xff]   ;;  %v2285_v56 = vld [vmem:[%s2857_s10 + $0xa8] ss:$16 sps:$4 sm:$0xff]  }
  0x96   : > { %1965 = vmatpush3.bf16.msra.mxu1 %v2237_v20  ;;  %1854 = vmatprep.subr.bf16.mxu0 %v2238_v21  ;;  %v2286_v57 = vld [vmem:[%s2857_s10 + $0xc4] ss:$16 sps:$4 sm:$0xff]   ;;  %v2288_v58 = vld [vmem:[%s2857_s10 + $0xcc] ss:$16 sps:$4 sm:$0xff]   ;;  %v2290_v59 = vld [vmem:[%s2857_s10 + $0xc0] ss:$16 sps:$4 sm:$0xff]  }
  0x97   : > { %1966 = vmatprep.subr.bf16.mxu1 %v2239_v22  ;;  %v2291_v60 = vld [vmem:[%s2857_s10 + $0xc8] ss:$16 sps:$4 sm:$0xff]   ;;  %v2292_v61 = vld [vmem:[%s2857_s10 + $0xe4] ss:$16 sps:$4 sm:$0xff]   ;;  %v2294_v62 = vld [vmem:[%s2857_s10 + $0xec] ss:$16 sps:$4 sm:$0xff]  }
  0x98   : > { %v2296_v63 = vld [vmem:[%s2857_s10 + $0xe0] ss:$16 sps:$4 sm:$0xff]   ;;  %v2297_v0 = vld [vmem:[%s2857_s10 + $0xe8] ss:$16 sps:$4 sm:$0xff]   ;;  %v2298_v1 = vld [vmem:[%s2857_s10 + $0x104] ss:$16 sps:$4 sm:$0xff]  }
  0x99   : > { %1855 = vmatpush3.bf16.msra.mxu0 %v2240_v23  ;;  %v2300_v2 = vld [vmem:[%s2857_s10 + $0x10c] ss:$16 sps:$4 sm:$0xff]   ;;  %v2302_v3 = vld [vmem:[%s2857_s10 + $0x100] ss:$16 sps:$4 sm:$0xff]   ;;  %v2303_v4 = vld [vmem:[%s2857_s10 + $0x108] ss:$16 sps:$4 sm:$0xff]  }
  0x9a   : > { %1967 = vmatpush3.bf16.msra.mxu1 %v2241_v24  ;;  %1856 = vmatprep.subr.bf16.mxu0 %v2242_v25  ;;  %v2304_v5 = vld [vmem:[%s2857_s10 + $0x124] ss:$16 sps:$4 sm:$0xff]   ;;  %v2306_v6 = vld [vmem:[%s2857_s10 + $0x12c] ss:$16 sps:$4 sm:$0xff]   ;;  %v2308_v7 = vld [vmem:[%s2857_s10 + $0x120] ss:$16 sps:$4 sm:$0xff]  }
  0x9b   : > { %1968 = vmatprep.subr.bf16.mxu1 %v2243_v26  ;;  %v2309_v8 = vld [vmem:[%s2857_s10 + $0x128] ss:$16 sps:$4 sm:$0xff]   ;;  %v2310_v9 = vld [vmem:[%s2857_s10 + $0x144] ss:$16 sps:$4 sm:$0xff]   ;;  %v2312_v10 = vld [vmem:[%s2857_s10 + $0x14c] ss:$16 sps:$4 sm:$0xff]  }
  0x9c   : > { %v2314_v11 = vld [vmem:[%s2857_s10 + $0x140] ss:$16 sps:$4 sm:$0xff]   ;;  %v2315_v12 = vld [vmem:[%s2857_s10 + $0x148] ss:$16 sps:$4 sm:$0xff]   ;;  %v2316_v13 = vld [vmem:[%s2857_s10 + $0x164] ss:$16 sps:$4 sm:$0xff]  }
  0x9d   : > { %1857 = vmatpush3.bf16.msra.mxu0 %v2244_v27  ;;  %v2318_v14 = vld [vmem:[%s2857_s10 + $0x16c] ss:$16 sps:$4 sm:$0xff]   ;;  %v2320_v15 = vld [vmem:[%s2857_s10 + $0x160] ss:$16 sps:$4 sm:$0xff]   ;;  %v2321_v16 = vld [vmem:[%s2857_s10 + $0x168] ss:$16 sps:$4 sm:$0xff]  }
  0x9e   : > { %1969 = vmatpush3.bf16.msra.mxu1 %v2245_v28  ;;  %1858 = vmatprep.subr.bf16.mxu0 %v2246_v29  ;;  %v2322_v17 = vld [vmem:[%s2857_s10 + $0x184] ss:$16 sps:$4 sm:$0xff]   ;;  %v2324_v18 = vld [vmem:[%s2857_s10 + $0x18c] ss:$16 sps:$4 sm:$0xff]   ;;  %v2326_v19 = vld [vmem:[%s2857_s10 + $0x180] ss:$16 sps:$4 sm:$0xff]  }
  0x9f   : > { %1970 = vmatprep.subr.bf16.mxu1 %v2247_v30  ;;  %v2327_v20 = vld [vmem:[%s2857_s10 + $0x188] ss:$16 sps:$4 sm:$0xff]   ;;  %v2328_v21 = vld [vmem:[%s2857_s10 + $0x1a4] ss:$16 sps:$4 sm:$0xff]   ;;  %v2330_v22 = vld [vmem:[%s2857_s10 + $0x1ac] ss:$16 sps:$4 sm:$0xff]  }
  0xa0   : > { %v2332_v23 = vld [vmem:[%s2857_s10 + $0x1a0] ss:$16 sps:$4 sm:$0xff]   ;;  %v2333_v24 = vld [vmem:[%s2857_s10 + $0x1a8] ss:$16 sps:$4 sm:$0xff]   ;;  %v2334_v25 = vld [vmem:[%s2857_s10 + $0x1c4] ss:$16 sps:$4 sm:$0xff]  }
  0xa1   : > { %1859 = vmatpush3.bf16.msra.mxu0 %v2248_v31  ;;  %v2336_v26 = vld [vmem:[%s2857_s10 + $0x1cc] ss:$16 sps:$4 sm:$0xff]   ;;  %v2338_v27 = vld [vmem:[%s2857_s10 + $0x1c0] ss:$16 sps:$4 sm:$0xff]   ;;  %v2339_v28 = vld [vmem:[%s2857_s10 + $0x1c8] ss:$16 sps:$4 sm:$0xff]  }
  0xa2   : > { %1971 = vmatpush3.bf16.msra.mxu1 %v2249_v32  ;;  %v2340_v29 = vld [vmem:[%s2857_s10 + $0x1e4] ss:$16 sps:$4 sm:$0xff]   ;;  %v2342_v30 = vld [vmem:[%s2857_s10 + $0x1ec] ss:$16 sps:$4 sm:$0xff]   ;;  %v2344_v31 = vld [vmem:[%s2857_s10 + $0x1e0] ss:$16 sps:$4 sm:$0xff]  }
  0xa3   : > { %v2345_v32 = vld [vmem:[%s2857_s10 + $0x1e8] ss:$16 sps:$4 sm:$0xff]  }
  0xa4   : > { %1030 = vmatmul.mubr.bf16.vlgmr.msra.gmra.mxu0 %v2250_v33 }
  0xa5   : > { %1191 = vmatmul.mubr.bf16.vlgmr.msra.gmra.mxu1 %v2253_v35  ;;  %1037 = vmatprep.mubr.bf16.mxu0 %v2256_v37 }
  0xa6   : > { %1198 = vmatprep.mubr.bf16.mxu1 %v2258_v38 }
  0xac   : > { %1038 = vmatmul.mubr.bf16.gmra.mxu0 %v2260_v39 }
  0xad   : > { %1199 = vmatmul.mubr.bf16.gmra.mxu1 %v2261_v40  ;;  %1045 = vmatprep.mubr.bf16.mxu0 %v2262_v41  ;;  %v325_v40 = vld [vmem:[#allocation2 + $0xb0] sm:$0xff] }
  0xae   : > { %1206 = vmatprep.mubr.bf16.mxu1 %v2264_v42 }
  0xb4   : > { %1046 = vmatmul.mubr.bf16.gmra.mxu0 %v2266_v43 }
  0xb5   : > { %1207 = vmatmul.mubr.bf16.gmra.mxu1 %v2267_v44  ;;  %1053 = vmatprep.mubr.bf16.mxu0 %v2268_v45 }
  0xb6   : > { %1214 = vmatprep.mubr.bf16.mxu1 %v2270_v46 }
  0xbc   : > { %1054 = vmatmul.mubr.bf16.gmra.mxu0 %v2272_v47 }
  0xbd   : > { %1215 = vmatmul.mubr.bf16.gmra.mxu1 %v2273_v48  ;;  %1061 = vmatprep.mubr.bf16.mxu0 %v2274_v49  ;;  %v326_v49 = vld [vmem:[#allocation2] sm:$0xff] }
  0xbe   : > { %1222 = vmatprep.mubr.bf16.mxu1 %v2276_v50 }
  0xc4   : > { %1062 = vmatmul.mubr.bf16.gmra.mxu0 %v2278_v51 }
  0xc5   : > { %1223 = vmatmul.mubr.bf16.gmra.mxu1 %v2279_v52  ;;  %1069 = vmatprep.mubr.bf16.mxu0 %v2280_v53 }
  0xc6   : > { %1230 = vmatprep.mubr.bf16.mxu1 %v2282_v54 }
  0xcc   : > { %1070 = vmatmul.mubr.bf16.gmra.mxu0 %v2284_v55 }
  0xcd   : > { %1231 = vmatmul.mubr.bf16.gmra.mxu1 %v2285_v56  ;;  %1077 = vmatprep.mubr.bf16.mxu0 %v2286_v57 }
  0xce   : > { %1238 = vmatprep.mubr.bf16.mxu1 %v2288_v58  ;;  %v327_v58 = vld [vmem:[#allocation2 + $0xd8] sm:$0xff] }
  0xd4   : > { %1078 = vmatmul.mubr.bf16.gmra.mxu0 %v2290_v59 }
  0xd5   : > { %1239 = vmatmul.mubr.bf16.gmra.mxu1 %v2291_v60  ;;  %1085 = vmatprep.mubr.bf16.mxu0 %v2292_v61 }
  0xd6   : > { %1246 = vmatprep.mubr.bf16.mxu1 %v2294_v62 }
  0xdc   : > { %1086 = vmatmul.mubr.bf16.gmra.mxu0 %v2296_v63 }
  0xdd   : > { %1247 = vmatmul.mubr.bf16.gmra.mxu1 %v2297_v0  ;;  %1093 = vmatprep.mubr.bf16.mxu0 %v2298_v1 }
  0xde   : > { %1254 = vmatprep.mubr.bf16.mxu1 %v2300_v2 }
  0xe4   : > { %1094 = vmatmul.mubr.bf16.gmra.mxu0 %v2302_v3  ;;  %v328_v3 = vld [vmem:[#allocation2 + $0x18] sm:$0xff] }
  0xe5   : > { %1255 = vmatmul.mubr.bf16.gmra.mxu1 %v2303_v4  ;;  %1101 = vmatprep.mubr.bf16.mxu0 %v2304_v5 }
  0xe6   : > { %1262 = vmatprep.mubr.bf16.mxu1 %v2306_v6 }
  0xec   : > { %1102 = vmatmul.mubr.bf16.gmra.mxu0 %v2308_v7 }
  0xed   : > { %1263 = vmatmul.mubr.bf16.gmra.mxu1 %v2309_v8  ;;  %1109 = vmatprep.mubr.bf16.mxu0 %v2310_v9 }
  0xee   : > { %1270 = vmatprep.mubr.bf16.mxu1 %v2312_v10 }
  0xf4   : > { %1110 = vmatmul.mubr.bf16.gmra.mxu0 %v2314_v11 }
  0xf5   : > { %1271 = vmatmul.mubr.bf16.gmra.mxu1 %v2315_v12  ;;  %1117 = vmatprep.mubr.bf16.mxu0 %v2316_v13  ;;  %v329_v12 = vld [vmem:[#allocation2 + $0x50] sm:$0xff] }
  0xf6   : > { %1278 = vmatprep.mubr.bf16.mxu1 %v2318_v14 }
  0xfc   : > { %1118 = vmatmul.mubr.bf16.gmra.mxu0 %v2320_v15 }
  0xfd   : > { %1279 = vmatmul.mubr.bf16.gmra.mxu1 %v2321_v16  ;;  %1125 = vmatprep.mubr.bf16.mxu0 %v2322_v17 }
  0xfe   : > { %1286 = vmatprep.mubr.bf16.mxu1 %v2324_v18 }
 0x104   : > { %1126 = vmatmul.mubr.bf16.gmra.mxu0 %v2326_v19 }
 0x105   : > { %1287 = vmatmul.mubr.bf16.gmra.mxu1 %v2327_v20  ;;  %1133 = vmatprep.mubr.bf16.mxu0 %v2328_v21  ;;  %v330_v21 = vld [vmem:[#allocation2 + $0x68] sm:$0xff] }
 0x106   : > { %1294 = vmatprep.mubr.bf16.mxu1 %v2330_v22 }
 0x10c   : > { %1134 = vmatmul.mubr.bf16.gmra.mxu0 %v2332_v23 }
 0x10d   : > { %1295 = vmatmul.mubr.bf16.gmra.mxu1 %v2333_v24  ;;  %1141 = vmatprep.mubr.bf16.mxu0 %v2334_v25 }
 0x10e   : > { %1302 = vmatprep.mubr.bf16.mxu1 %v2336_v26 }
 0x114   : > { %1142 = vmatmul.mubr.bf16.gmra.mxu0 %v2338_v27 }
 0x115   : > { %1303 = vmatmul.mubr.bf16.gmra.mxu1 %v2339_v28  ;;  %1149 = vmatprep.mubr.bf16.mxu0 %v2340_v29 }
 0x116   : > { %1310 = vmatprep.mubr.bf16.mxu1 %v2342_v30  ;;  %v331_v30 = vld [vmem:[#allocation2 + $0x30] sm:$0xff] }
 0x11c   : > { %1150 = vmatmul.mubr.bf16.gmra.mxu0 %v2344_v31 }
 0x11d   : > { %1311 = vmatmul.mubr.bf16.gmra.mxu1 %v2345_v32 }
 0x164   : > { %v1860_v33 = vpop.f32.mrf.mxu0 }
 0x165   : > { %v1972_v34 = vpop.f32.mrf.mxu1 }
 0x166   : > { %v1861_v35 = vpop.f32.mrf.mxu0 }
 0x167   : > { %v1862_v36 = vadd.f32 %v1861_v35, %v1860_v33  ;;  %v1973_v37 = vpop.f32.mrf.mxu1 }
 0x168   : > { %v1974_v38 = vadd.f32 %v1973_v37, %v1972_v34  ;;  %v1863_v39 = vpop.f32.mrf.mxu0 }
 0x169   : > { %v1975_v41 = vpop.f32.mrf.mxu1 }
 0x16a   : > { %v1193_v42 = vadd.f32 %v1974_v38, %v1862_v36  ;;  %v1864_v43 = vpop.f32.mrf.mxu0 }
 0x16b   : > { %v1865_v44 = vadd.f32 %v1864_v43, %v1863_v39  ;;  %v1976_v45 = vpop.f32.mrf.mxu1  ;;  %v332_v39 = vld [vmem:[#allocation2 + $0x48] sm:$0xff] }
 0x16c   : > { %v1319_v46 = vadd.f32 %v1193_v42, %v325_v40  ;;  %v1977_v47 = vadd.f32 %v1976_v45, %v1975_v41  ;;  %v1866_v48 = vpop.f32.mrf.mxu0 }
 0x16d   : > { %v1978_v50 = vpop.f32.mrf.mxu1 }
 0x16e   : > { %1351 = vst [vmem:[#allocation2 + $0xb0] sm:$0xff] %v1319_v46  ;;  %v1196_v51 = vadd.f32 %v1977_v47, %v1865_v44  ;;  %v1867_v52 = vpop.f32.mrf.mxu0 }
 0x16f   : > { %v1868_v53 = vadd.f32 %v1867_v52, %v1866_v48  ;;  %v1979_v54 = vpop.f32.mrf.mxu1  ;;  %v333_v48 = vld [vmem:[#allocation2 + $0x80] sm:$0xff] }
 0x170   : > { %v1320_v55 = vadd.f32 %v1196_v51, %v326_v49  ;;  %v1980_v56 = vadd.f32 %v1979_v54, %v1978_v50  ;;  %v1869_v57 = vpop.f32.mrf.mxu0 }
 0x171   : > { %v1981_v59 = vpop.f32.mrf.mxu1 }
 0x172   : > { %1352 = vst [vmem:[#allocation2] sm:$0xff] %v1320_v55  ;;  %v1201_v60 = vadd.f32 %v1980_v56, %v1868_v53  ;;  %v1870_v61 = vpop.f32.mrf.mxu0 }
 0x173   : > { %v1871_v62 = vadd.f32 %v1870_v61, %v1869_v57  ;;  %v1982_v63 = vpop.f32.mrf.mxu1  ;;  %v334_v57 = vld [vmem:[#allocation2 + $0x88] sm:$0xff] }
 0x174   : > { %v1321_v0 = vadd.f32 %v1201_v60, %v327_v58  ;;  %v1983_v1 = vadd.f32 %v1982_v63, %v1981_v59  ;;  %v1872_v2 = vpop.f32.mrf.mxu0 }
 0x175   : > { %v1984_v4 = vpop.f32.mrf.mxu1 }
 0x176   : > { %1353 = vst [vmem:[#allocation2 + $0xd8] sm:$0xff] %v1321_v0  ;;  %v1204_v5 = vadd.f32 %v1983_v1, %v1871_v62  ;;  %v1873_v6 = vpop.f32.mrf.mxu0 }
 0x177   : > { %v1874_v7 = vadd.f32 %v1873_v6, %v1872_v2  ;;  %v1985_v8 = vpop.f32.mrf.mxu1  ;;  %v335_v2 = vld [vmem:[#allocation2 + $0xe8] sm:$0xff] }
 0x178   : > { %v1322_v9 = vadd.f32 %v1204_v5, %v328_v3  ;;  %v1986_v10 = vadd.f32 %v1985_v8, %v1984_v4  ;;  %v1875_v11 = vpop.f32.mrf.mxu0 }
 0x179   : > { %v1987_v13 = vpop.f32.mrf.mxu1 }
 0x17a   : > { %1354 = vst [vmem:[#allocation2 + $0x18] sm:$0xff] %v1322_v9  ;;  %v1209_v14 = vadd.f32 %v1986_v10, %v1874_v7  ;;  %v1876_v15 = vpop.f32.mrf.mxu0 }
 0x17b   : > { %v1877_v16 = vadd.f32 %v1876_v15, %v1875_v11  ;;  %v1988_v17 = vpop.f32.mrf.mxu1  ;;  %v336_v11 = vld [vmem:[#allocation2 + $0xb8] sm:$0xff] }
 0x17c   : > { %v1323_v18 = vadd.f32 %v1209_v14, %v329_v12  ;;  %v1989_v19 = vadd.f32 %v1988_v17, %v1987_v13  ;;  %v1878_v20 = vpop.f32.mrf.mxu0 }
 0x17d   : > { %v1990_v22 = vpop.f32.mrf.mxu1 }
 0x17e   : > { %1355 = vst [vmem:[#allocation2 + $0x50] sm:$0xff] %v1323_v18  ;;  %v1212_v23 = vadd.f32 %v1989_v19, %v1877_v16  ;;  %v1879_v24 = vpop.f32.mrf.mxu0 }
 0x17f   : > { %v1880_v25 = vadd.f32 %v1879_v24, %v1878_v20  ;;  %v1991_v26 = vpop.f32.mrf.mxu1  ;;  %v337_v20 = vld [vmem:[#allocation2 + $0x60] sm:$0xff] }
 0x180   : > { %v1324_v27 = vadd.f32 %v1212_v23, %v330_v21  ;;  %v1992_v28 = vadd.f32 %v1991_v26, %v1990_v22  ;;  %v1881_v29 = vpop.f32.mrf.mxu0 }
 0x181   : > { %v1993_v31 = vpop.f32.mrf.mxu1 }
 0x182   : > { %1356 = vst [vmem:[#allocation2 + $0x68] sm:$0xff] %v1324_v27  ;;  %v1217_v32 = vadd.f32 %v1992_v28, %v1880_v25  ;;  %v1882_v33 = vpop.f32.mrf.mxu0 }
 0x183   : > { %v1883_v34 = vadd.f32 %v1882_v33, %v1881_v29  ;;  %v1994_v35 = vpop.f32.mrf.mxu1  ;;  %v338_v29 = vld [vmem:[#allocation2 + $0xf0] sm:$0xff] }
 0x184   : > { %v1325_v36 = vadd.f32 %v1217_v32, %v331_v30  ;;  %v1995_v37 = vadd.f32 %v1994_v35, %v1993_v31  ;;  %v1884_v38 = vpop.f32.mrf.mxu0 }
 0x185   : > { %v1996_v40 = vpop.f32.mrf.mxu1 }
 0x186   : > { %1357 = vst [vmem:[#allocation2 + $0x30] sm:$0xff] %v1325_v36  ;;  %v1220_v41 = vadd.f32 %v1995_v37, %v1883_v34  ;;  %v1885_v42 = vpop.f32.mrf.mxu0 }
 0x187   : > { %v1886_v43 = vadd.f32 %v1885_v42, %v1884_v38  ;;  %v1997_v44 = vpop.f32.mrf.mxu1  ;;  %v339_v38 = vld [vmem:[#allocation2 + $0x8] sm:$0xff] }
 0x188   : > { %v1326_v45 = vadd.f32 %v1220_v41, %v332_v39  ;;  %v1998_v46 = vadd.f32 %v1997_v44, %v1996_v40  ;;  %v1887_v47 = vpop.f32.mrf.mxu0 }
 0x189   : > { %v1999_v49 = vpop.f32.mrf.mxu1 }
 0x18a   : > { %1358 = vst [vmem:[#allocation2 + $0x48] sm:$0xff] %v1326_v45  ;;  %v1225_v50 = vadd.f32 %v1998_v46, %v1886_v43  ;;  %v1888_v51 = vpop.f32.mrf.mxu0 }
 0x18b   : > { %v1889_v52 = vadd.f32 %v1888_v51, %v1887_v47  ;;  %v2000_v53 = vpop.f32.mrf.mxu1  ;;  %v340_v47 = vld [vmem:[#allocation2 + $0x78] sm:$0xff] }
 0x18c   : > { %v1327_v54 = vadd.f32 %v1225_v50, %v333_v48  ;;  %v2001_v55 = vadd.f32 %v2000_v53, %v1999_v49  ;;  %v1890_v56 = vpop.f32.mrf.mxu0 }
 0x18d   : > { %v2002_v58 = vpop.f32.mrf.mxu1 }
 0x18e   : > { %1359 = vst [vmem:[#allocation2 + $0x80] sm:$0xff] %v1327_v54  ;;  %v1228_v59 = vadd.f32 %v2001_v55, %v1889_v52  ;;  %v1891_v60 = vpop.f32.mrf.mxu0 }
 0x18f   : > { %v1892_v61 = vadd.f32 %v1891_v60, %v1890_v56  ;;  %v2003_v62 = vpop.f32.mrf.mxu1  ;;  %v341_v56 = vld [vmem:[#allocation2 + $0x38] sm:$0xff] }
 0x190   : > { %v1328_v63 = vadd.f32 %v1228_v59, %v334_v57  ;;  %v2004_v0 = vadd.f32 %v2003_v62, %v2002_v58  ;;  %v1893_v1 = vpop.f32.mrf.mxu0 }
 0x191   : > { %v2005_v3 = vpop.f32.mrf.mxu1 }
 0x192   : > { %1360 = vst [vmem:[#allocation2 + $0x88] sm:$0xff] %v1328_v63  ;;  %v1233_v4 = vadd.f32 %v2004_v0, %v1892_v61  ;;  %v1894_v5 = vpop.f32.mrf.mxu0 }
 0x193   : > { %v1895_v6 = vadd.f32 %v1894_v5, %v1893_v1  ;;  %v2006_v7 = vpop.f32.mrf.mxu1  ;;  %v342_v1 = vld [vmem:[#allocation2 + $0x58] sm:$0xff] }
 0x194   : > { %v1329_v8 = vadd.f32 %v1233_v4, %v335_v2  ;;  %v2007_v9 = vadd.f32 %v2006_v7, %v2005_v3  ;;  %v1896_v10 = vpop.f32.mrf.mxu0 }
 0x195   : > { %v2008_v12 = vpop.f32.mrf.mxu1 }
 0x196   : > { %1361 = vst [vmem:[#allocation2 + $0xe8] sm:$0xff] %v1329_v8  ;;  %v1236_v13 = vadd.f32 %v2007_v9, %v1895_v6  ;;  %v1897_v14 = vpop.f32.mrf.mxu0 }
 0x197   : > { %v1898_v15 = vadd.f32 %v1897_v14, %v1896_v10  ;;  %v2009_v16 = vpop.f32.mrf.mxu1  ;;  %v343_v10 = vld [vmem:[#allocation2 + $0x40] sm:$0xff] }
 0x198   : > { %v1330_v17 = vadd.f32 %v1236_v13, %v336_v11  ;;  %v2010_v18 = vadd.f32 %v2009_v16, %v2008_v12  ;;  %v1899_v19 = vpop.f32.mrf.mxu0 }
 0x199   : > { %v2011_v21 = vpop.f32.mrf.mxu1 }
 0x19a   : > { %1362 = vst [vmem:[#allocation2 + $0xb8] sm:$0xff] %v1330_v17  ;;  %v1241_v22 = vadd.f32 %v2010_v18, %v1898_v15  ;;  %v1900_v23 = vpop.f32.mrf.mxu0 }
 0x19b   : > { %v1901_v24 = vadd.f32 %v1900_v23, %v1899_v19  ;;  %v2012_v25 = vpop.f32.mrf.mxu1  ;;  %v344_v19 = vld [vmem:[#allocation2 + $0xc8] sm:$0xff] }
 0x19c   : > { %v1331_v26 = vadd.f32 %v1241_v22, %v337_v20  ;;  %v2013_v27 = vadd.f32 %v2012_v25, %v2011_v21  ;;  %v1902_v28 = vpop.f32.mrf.mxu0 }
 0x19d   : > { %v2014_v30 = vpop.f32.mrf.mxu1 }
 0x19e   : > { %1363 = vst [vmem:[#allocation2 + $0x60] sm:$0xff] %v1331_v26  ;;  %v1244_v31 = vadd.f32 %v2013_v27, %v1901_v24  ;;  %v1903_v32 = vpop.f32.mrf.mxu0 }
 0x19f   : > { %v1904_v33 = vadd.f32 %v1903_v32, %v1902_v28  ;;  %v2015_v34 = vpop.f32.mrf.mxu1  ;;  %v345_v28 = vld [vmem:[#allocation2 + $0xe0] sm:$0xff] }
 0x1a0   : > { %v1332_v35 = vadd.f32 %v1244_v31, %v338_v29  ;;  %v2016_v36 = vadd.f32 %v2015_v34, %v2014_v30  ;;  %v1905_v37 = vpop.f32.mrf.mxu0 }
 0x1a1   : > { %v2017_v39 = vpop.f32.mrf.mxu1 }
 0x1a2   : > { %1364 = vst [vmem:[#allocation2 + $0xf0] sm:$0xff] %v1332_v35  ;;  %v1249_v40 = vadd.f32 %v2016_v36, %v1904_v33  ;;  %v1906_v41 = vpop.f32.mrf.mxu0 }
 0x1a3   : > { %v1907_v42 = vadd.f32 %v1906_v41, %v1905_v37  ;;  %v2018_v43 = vpop.f32.mrf.mxu1  ;;  %v346_v37 = vld [vmem:[#allocation2 + $0x90] sm:$0xff] }
 0x1a4   : > { %v1333_v44 = vadd.f32 %v1249_v40, %v339_v38  ;;  %v2019_v45 = vadd.f32 %v2018_v43, %v2017_v39  ;;  %v1908_v46 = vpop.f32.mrf.mxu0 }
 0x1a5   : > { %v2020_v48 = vpop.f32.mrf.mxu1 }
 0x1a6   : > { %1365 = vst [vmem:[#allocation2 + $0x8] sm:$0xff] %v1333_v44  ;;  %v1252_v49 = vadd.f32 %v2019_v45, %v1907_v42  ;;  %v1909_v50 = vpop.f32.mrf.mxu0 }
 0x1a7   : > { %v1910_v51 = vadd.f32 %v1909_v50, %v1908_v46  ;;  %v2021_v52 = vpop.f32.mrf.mxu1  ;;  %v347_v46 = vld [vmem:[#allocation2 + $0x70] sm:$0xff] }
 0x1a8   : > { %v1334_v53 = vadd.f32 %v1252_v49, %v340_v47  ;;  %v2022_v54 = vadd.f32 %v2021_v52, %v2020_v48  ;;  %v1911_v55 = vpop.f32.mrf.mxu0 }
 0x1a9   : > { %v2023_v57 = vpop.f32.mrf.mxu1 }
 0x1aa   : > { %1366 = vst [vmem:[#allocation2 + $0x78] sm:$0xff] %v1334_v53  ;;  %v1257_v58 = vadd.f32 %v2022_v54, %v1910_v51  ;;  %v1912_v59 = vpop.f32.mrf.mxu0 }
 0x1ab   : > { %v1913_v60 = vadd.f32 %v1912_v59, %v1911_v55  ;;  %v2024_v61 = vpop.f32.mrf.mxu1  ;;  %v348_v55 = vld [vmem:[#allocation2 + $0xc0] sm:$0xff] }
 0x1ac   : > { %v1335_v62 = vadd.f32 %v1257_v58, %v341_v56  ;;  %v2025_v63 = vadd.f32 %v2024_v61, %v2023_v57  ;;  %v1914_v0 = vpop.f32.mrf.mxu0 }
 0x1ad   : > { %v2026_v2 = vpop.f32.mrf.mxu1 }
 0x1ae   : > { %1367 = vst [vmem:[#allocation2 + $0x38] sm:$0xff] %v1335_v62  ;;  %v1260_v3 = vadd.f32 %v2025_v63, %v1913_v60  ;;  %v1915_v4 = vpop.f32.mrf.mxu0 }
 0x1af   : > { %v1916_v5 = vadd.f32 %v1915_v4, %v1914_v0  ;;  %v2027_v6 = vpop.f32.mrf.mxu1  ;;  %v349_v0 = vld [vmem:[#allocation2 + $0xa8] sm:$0xff] }
 0x1b0   : > { %v1336_v7 = vadd.f32 %v1260_v3, %v342_v1  ;;  %v2028_v8 = vadd.f32 %v2027_v6, %v2026_v2  ;;  %v1917_v9 = vpop.f32.mrf.mxu0 }
 0x1b1   : > { %v2029_v11 = vpop.f32.mrf.mxu1 }
 0x1b2   : > { %1368 = vst [vmem:[#allocation2 + $0x58] sm:$0xff] %v1336_v7  ;;  %v1265_v12 = vadd.f32 %v2028_v8, %v1916_v5  ;;  %v1918_v13 = vpop.f32.mrf.mxu0 }
 0x1b3   : > { %v1919_v14 = vadd.f32 %v1918_v13, %v1917_v9  ;;  %v2030_v15 = vpop.f32.mrf.mxu1  ;;  %v350_v9 = vld [vmem:[#allocation2 + $0xd0] sm:$0xff] }
 0x1b4   : > { %v1337_v16 = vadd.f32 %v1265_v12, %v343_v10  ;;  %v2031_v17 = vadd.f32 %v2030_v15, %v2029_v11  ;;  %v1920_v18 = vpop.f32.mrf.mxu0 }
 0x1b5   : > { %v2032_v20 = vpop.f32.mrf.mxu1 }
 0x1b6   : > { %1369 = vst [vmem:[#allocation2 + $0x40] sm:$0xff] %v1337_v16  ;;  %v1268_v21 = vadd.f32 %v2031_v17, %v1919_v14  ;;  %v1921_v22 = vpop.f32.mrf.mxu0 }
 0x1b7   : > { %v1922_v23 = vadd.f32 %v1921_v22, %v1920_v18  ;;  %v2033_v24 = vpop.f32.mrf.mxu1  ;;  %v351_v18 = vld [vmem:[#allocation2 + $0x10] sm:$0xff] }
 0x1b8   : > { %v1338_v25 = vadd.f32 %v1268_v21, %v344_v19  ;;  %v2034_v26 = vadd.f32 %v2033_v24, %v2032_v20  ;;  %v1923_v27 = vpop.f32.mrf.mxu0 }
 0x1b9   : > { %v2035_v29 = vpop.f32.mrf.mxu1 }
 0x1ba   : > { %1370 = vst [vmem:[#allocation2 + $0xc8] sm:$0xff] %v1338_v25  ;;  %v1273_v30 = vadd.f32 %v2034_v26, %v1922_v23  ;;  %v1924_v31 = vpop.f32.mrf.mxu0 }
 0x1bb   : > { %v1925_v32 = vadd.f32 %v1924_v31, %v1923_v27  ;;  %v2036_v33 = vpop.f32.mrf.mxu1  ;;  %v352_v27 = vld [vmem:[#allocation2 + $0x28] sm:$0xff] }
 0x1bc   : > { %v1339_v34 = vadd.f32 %v1273_v30, %v345_v28  ;;  %v2037_v35 = vadd.f32 %v2036_v33, %v2035_v29  ;;  %v1926_v36 = vpop.f32.mrf.mxu0 }
 0x1bd   : > { %v2038_v38 = vpop.f32.mrf.mxu1 }
 0x1be   : > { %1371 = vst [vmem:[#allocation2 + $0xe0] sm:$0xff] %v1339_v34  ;;  %v1276_v39 = vadd.f32 %v2037_v35, %v1925_v32  ;;  %v1927_v40 = vpop.f32.mrf.mxu0 }
 0x1bf   : > { %v1928_v41 = vadd.f32 %v1927_v40, %v1926_v36  ;;  %v2039_v42 = vpop.f32.mrf.mxu1  ;;  %v353_v36 = vld [vmem:[#allocation2 + $0xa0] sm:$0xff] }
 0x1c0   : > { %v1340_v43 = vadd.f32 %v1276_v39, %v346_v37  ;;  %v2040_v44 = vadd.f32 %v2039_v42, %v2038_v38  ;;  %v1929_v45 = vpop.f32.mrf.mxu0 }
 0x1c1   : > { %v2041_v47 = vpop.f32.mrf.mxu1 }
 0x1c2   : > { %1372 = vst [vmem:[#allocation2 + $0x90] sm:$0xff] %v1340_v43  ;;  %v1281_v48 = vadd.f32 %v2040_v44, %v1928_v41  ;;  %v1930_v49 = vpop.f32.mrf.mxu0 }
 0x1c3   : > { %v1931_v50 = vadd.f32 %v1930_v49, %v1929_v45  ;;  %v2042_v51 = vpop.f32.mrf.mxu1  ;;  %v354_v45 = vld [vmem:[#allocation2 + $0xf8] sm:$0xff] }
 0x1c4   : > { %v1341_v52 = vadd.f32 %v1281_v48, %v347_v46  ;;  %v2043_v53 = vadd.f32 %v2042_v51, %v2041_v47  ;;  %v1932_v54 = vpop.f32.mrf.mxu0 }
 0x1c5   : > { %v2044_v56 = vpop.f32.mrf.mxu1 }
 0x1c6   : > { %1373 = vst [vmem:[#allocation2 + $0x70] sm:$0xff] %v1341_v52  ;;  %v1284_v57 = vadd.f32 %v2043_v53, %v1931_v50  ;;  %v1933_v58 = vpop.f32.mrf.mxu0 }
 0x1c7   : > { %v1934_v59 = vadd.f32 %v1933_v58, %v1932_v54  ;;  %v2045_v60 = vpop.f32.mrf.mxu1  ;;  %v355_v54 = vld [vmem:[#allocation2 + $0x20] sm:$0xff] }
 0x1c8   : > { %v1342_v61 = vadd.f32 %v1284_v57, %v348_v55  ;;  %v2046_v62 = vadd.f32 %v2045_v60, %v2044_v56  ;;  %v1935_v63 = vpop.f32.mrf.mxu0 }
 0x1c9   : > { %v2047_v1 = vpop.f32.mrf.mxu1 }
 0x1ca   : > { %1374 = vst [vmem:[#allocation2 + $0xc0] sm:$0xff] %v1342_v61  ;;  %v1289_v2 = vadd.f32 %v2046_v62, %v1934_v59  ;;  %v1936_v3 = vpop.f32.mrf.mxu0  ;;  %v356_v62 = vld [vmem:[#allocation2 + $0x98] sm:$0xff] }
 0x1cb   : > { %v1937_v4 = vadd.f32 %v1936_v3, %v1935_v63  ;;  %v2048_v5 = vpop.f32.mrf.mxu1 }
 0x1cc   : > { %v1343_v6 = vadd.f32 %v1289_v2, %v349_v0  ;;  %v2049_v7 = vadd.f32 %v2048_v5, %v2047_v1  ;;  %v1938_v8 = vpop.f32.mrf.mxu0 }
 0x1cd   : > { %v2050_v10 = vpop.f32.mrf.mxu1 }
 0x1ce   : > { %1375 = vst [vmem:[#allocation2 + $0xa8] sm:$0xff] %v1343_v6  ;;  %v1292_v11 = vadd.f32 %v2049_v7, %v1937_v4  ;;  %v1939_v12 = vpop.f32.mrf.mxu0 }
 0x1cf   : > { %v1940_v13 = vadd.f32 %v1939_v12, %v1938_v8  ;;  %v2051_v14 = vpop.f32.mrf.mxu1 }
 0x1d0   : > { %v1344_v15 = vadd.f32 %v1292_v11, %v350_v9  ;;  %v2052_v16 = vadd.f32 %v2051_v14, %v2050_v10  ;;  %v1941_v17 = vpop.f32.mrf.mxu0 }
 0x1d1   : > { %v2053_v19 = vpop.f32.mrf.mxu1 }
 0x1d2   : > { %1376 = vst [vmem:[#allocation2 + $0xd0] sm:$0xff] %v1344_v15  ;;  %v1297_v20 = vadd.f32 %v2052_v16, %v1940_v13  ;;  %v1942_v21 = vpop.f32.mrf.mxu0 }
 0x1d3   : > { %v1943_v22 = vadd.f32 %v1942_v21, %v1941_v17  ;;  %v2054_v23 = vpop.f32.mrf.mxu1 }
 0x1d4   : > { %v1345_v24 = vadd.f32 %v1297_v20, %v351_v18  ;;  %v2055_v25 = vadd.f32 %v2054_v23, %v2053_v19  ;;  %v1944_v26 = vpop.f32.mrf.mxu0 }
 0x1d5   : > { %v2056_v28 = vpop.f32.mrf.mxu1 }
 0x1d6   : > { %1377 = vst [vmem:[#allocation2 + $0x10] sm:$0xff] %v1345_v24  ;;  %v1300_v29 = vadd.f32 %v2055_v25, %v1943_v22  ;;  %v1945_v30 = vpop.f32.mrf.mxu0 }
 0x1d7   : > { %v1946_v31 = vadd.f32 %v1945_v30, %v1944_v26  ;;  %v2057_v32 = vpop.f32.mrf.mxu1 }
 0x1d8   : > { %v1346_v33 = vadd.f32 %v1300_v29, %v352_v27  ;;  %v2058_v34 = vadd.f32 %v2057_v32, %v2056_v28  ;;  %v1947_v35 = vpop.f32.mrf.mxu0 }
 0x1d9   : > { %v2059_v37 = vpop.f32.mrf.mxu1 }
 0x1da   : > { %1378 = vst [vmem:[#allocation2 + $0x28] sm:$0xff] %v1346_v33  ;;  %v1305_v38 = vadd.f32 %v2058_v34, %v1946_v31  ;;  %v1948_v39 = vpop.f32.mrf.mxu0 }
 0x1db   : > { %v1949_v40 = vadd.f32 %v1948_v39, %v1947_v35  ;;  %v2060_v41 = vpop.f32.mrf.mxu1 }
 0x1dc   : > { %v1347_v42 = vadd.f32 %v1305_v38, %v353_v36  ;;  %v2061_v43 = vadd.f32 %v2060_v41, %v2059_v37  ;;  %v1950_v44 = vpop.f32.mrf.mxu0 }
 0x1dd   : > { %v2062_v46 = vpop.f32.mrf.mxu1 }
 0x1de   : > { %1379 = vst [vmem:[#allocation2 + $0xa0] sm:$0xff] %v1347_v42  ;;  %v1308_v47 = vadd.f32 %v2061_v43, %v1949_v40  ;;  %v1951_v48 = vpop.f32.mrf.mxu0 }
 0x1df   : > { %v1952_v49 = vadd.f32 %v1951_v48, %v1950_v44  ;;  %v2063_v50 = vpop.f32.mrf.mxu1 }
 0x1e0   : > { %v1348_v51 = vadd.f32 %v1308_v47, %v354_v45  ;;  %v2064_v52 = vadd.f32 %v2063_v50, %v2062_v46  ;;  %v1953_v53 = vpop.f32.mrf.mxu0 }
 0x1e1   : > { %v2065_v55 = vpop.f32.mrf.mxu1 }
 0x1e2   : > { %1380 = vst [vmem:[#allocation2 + $0xf8] sm:$0xff] %v1348_v51  ;;  %v1313_v56 = vadd.f32 %v2064_v52, %v1952_v49  ;;  %v1954_v57 = vpop.f32.mrf.mxu0 }
 0x1e3   : > { %v1955_v58 = vadd.f32 %v1954_v57, %v1953_v53  ;;  %v2066_v59 = vpop.f32.mrf.mxu1 }
 0x1e4   : > { %v1349_v60 = vadd.f32 %v1313_v56, %v355_v54  ;;  %v2067_v61 = vadd.f32 %v2066_v59, %v2065_v55 }
 0x1e6   : > { %1381 = vst [vmem:[#allocation2 + $0x20] sm:$0xff] %v1349_v60  ;;  %v1316_v63 = vadd.f32 %v2067_v61, %v1955_v58  ;;  %1386 = sbr.rel (%p1834_p4) target bundleno = 527 (0x20f), region = 56 }
 0x1e8   : > { %v1350_v0 = vadd.f32 %v1316_v63, %v356_v62 }
 0x1ea   : > { %1382 = vst [vmem:[#allocation2 + $0x98] sm:$0xff] %v1350_v0 }
 0x1eb   : > { %v1387_v1 = vld [vmem:[#allocation2 + $0xb0] sm:$0xff]  ;;  %v2966_v2 = vld [vmem:[#allocation7] ss:$0 sm:$0xff]  ;;  %v1389_v6 = vld [vmem:[#allocation2 + $0xd8] sm:$0xff]  ;;  %v2978_v24 = vstv %s1458_s16 }
 0x1ec   : > { %v1388_v3 = vld [vmem:[#allocation2] sm:$0xff]  ;;  %v1426_v4 = vadd.f32 %v2966_v2, %v1387_v1  ;;  %v1390_v7 = vld [vmem:[#allocation2 + $0x18] sm:$0xff]  ;;  %v1391_v8 = vld [vmem:[#allocation2 + $0x50] sm:$0xff]  ;;  %v1428_v9 = vadd.f32 %v2966_v2, %v1389_v6 }
 0x1ed   : > { %v1427_v5 = vadd.f32 %v2966_v2, %v1388_v3  ;;  %v1429_v10 = vadd.f32 %v2966_v2, %v1390_v7  ;;  %v1430_v11 = vadd.f32 %v2966_v2, %v1391_v8  ;;  %v1392_v12 = vld [vmem:[#allocation2 + $0x68] sm:$0xff]  ;;  %v1393_v13 = vld [vmem:[#allocation2 + $0x30] sm:$0xff]  ;;  %v1395_v17 = vld [vmem:[#allocation2 + $0x80] sm:$0xff] }
 0x1ee   : > { %v1394_v14 = vld [vmem:[#allocation2 + $0x48] sm:$0xff]  ;;  %vm1459_vm0 = vcmp.gt.f32.partialorder %v1426_v4, 0.0  ;;  %v1431_v15 = vadd.f32 %v2966_v2, %v1392_v12  ;;  %v1432_v16 = vadd.f32 %v2966_v2, %v1393_v13  ;;  %vm1461_vm2 = vcmp.gt.f32.partialorder %v1428_v9, 0.0  ;;  %v1398_v21 = vld [vmem:[#allocation2 + $0xb8] sm:$0xff]  ;;  %v1399_v43 = vld [vmem:[#allocation2 + $0x60] sm:$0xff] }
 0x1ef   : > { %vm1460_vm1 = vcmp.gt.f32.partialorder %v1427_v5, 0.0  ;;  %v1396_v18 = vld [vmem:[#allocation2 + $0x88] sm:$0xff]  ;;  %vm1462_vm3 = vcmp.gt.f32.partialorder %v1429_v10, 0.0  ;;  %vm1463_vm4 = vcmp.gt.f32.partialorder %v1430_v11, 0.0  ;;  %v1433_v20 = vadd.f32 %v2966_v2, %v1394_v14  ;;  %v1400_v44 = vld [vmem:[#allocation2 + $0xf0] sm:$0xff]  ;;  %v1402_v48 = vld [vmem:[#allocation2 + $0x78] sm:$0xff] }
 0x1f0   : > { %v1397_v19 = vld [vmem:[#allocation2 + $0xe8] sm:$0xff]  ;;  %vm1464_vm5 = vcmp.gt.f32.partialorder %v1431_v15, 0.0  ;;  %vm1465_vm6 = vcmp.gt.f32.partialorder %v1432_v16, 0.0  ;;  %v1434_v22 = vadd.f32 %v2966_v2, %v1395_v17  ;;  %v1435_v23 = vadd.f32 %v2966_v2, %v1396_v18  ;;  %v1403_v59 = vld [vmem:[#allocation2 + $0x38] sm:$0xff]  ;;  %v1405_v63 = vld [vmem:[#allocation2 + $0x40] sm:$0xff] }
 0x1f1   : > { %vm1466_vm7 = vcmp.gt.f32.partialorder %v1433_v20, 0.0  ;;  %v1436_v25 = vadd.f32 %v2966_v2, %v1397_v19  ;;  %v1437_v26 = vadd.f32 %v2966_v2, %v1398_v21  ;;  %v1492_v27 = vmul.f32 %v2978_v24, %v1426_v4  ;;  %v1401_v47 = vld [vmem:[#allocation2 + $0x8] sm:$0xff]  ;;  %v1404_v60 = vld [vmem:[#allocation2 + $0x58] sm:$0xff]  ;;  %v1407_v12 = vld [vmem:[#allocation2 + $0xe0] sm:$0xff] }
 0x1f2   : > { %v1493_v28 = vmul.f32 %v2978_v24, %v1427_v5  ;;  %v1494_v29 = vmul.f32 %v2978_v24, %v1428_v9  ;;  %v1495_v30 = vmul.f32 %v2978_v24, %v1429_v10  ;;  %v1496_v31 = vmul.f32 %v2978_v24, %v1430_v11  ;;  %v1406_v0 = vld [vmem:[#allocation2 + $0xc8] sm:$0xff]  ;;  %v1408_v13 = vld [vmem:[#allocation2 + $0x90] sm:$0xff]  ;;  %v1410_v17 = vld [vmem:[#allocation2 + $0xc0] sm:$0xff] }
 0x1f3   : > { %v1497_v32 = vmul.f32 %v2978_v24, %v1431_v15  ;;  %v1498_v33 = vmul.f32 %v2978_v24, %v1432_v16  ;;  %v1499_v34 = vmul.f32 %v2978_v24, %v1433_v20  ;;  %v1524_v35 = vsel %vm1459_vm0, %v1426_v4, %v1492_v27 }
 0x1f4   : > { %v1525_v36 = vsel %vm1460_vm1, %v1427_v5, %v1493_v28  ;;  %v1526_v37 = vsel %vm1461_vm2, %v1428_v9, %v1494_v29  ;;  %v1527_v38 = vsel %vm1462_vm3, %v1429_v10, %v1495_v30  ;;  %1556 = vst [vmem:[%s2866_s7] sm:$0xff] %v1524_v35  ;;  %v1528_v39 = vsel %vm1463_vm4, %v1430_v11, %v1496_v31  ;;  %v1411_v29 = vld [vmem:[#allocation2 + $0xa8] sm:$0xff]  ;;  %v1412_v30 = vld [vmem:[#allocation2 + $0xd0] sm:$0xff] }
 0x1f5   : > { %1557 = vst [vmem:[%s2866_s7 + $0x8] sm:$0xff] %v1525_v36  ;;  %1558 = vst [vmem:[%s2866_s7 + $0x10] sm:$0xff] %v1526_v37  ;;  %v1529_v40 = vsel %vm1464_vm5, %v1431_v15, %v1497_v32  ;;  %v1530_v41 = vsel %vm1465_vm6, %v1432_v16, %v1498_v33  ;;  %v1531_v42 = vsel %vm1466_vm7, %v1433_v20, %v1499_v34  ;;  %vm1467_vm8 = vcmp.gt.f32.partialorder %v1434_v22, 0.0  ;;  %v1409_v16 = vld [vmem:[#allocation2 + $0x70] sm:$0xff]  ;;  %v1414_v34 = vld [vmem:[#allocation2 + $0x28] sm:$0xff] }
 0x1f6   : > { %1559 = vst [vmem:[%s2866_s7 + $0x18] sm:$0xff] %v1527_v38  ;;  %1560 = vst [vmem:[%s2866_s7 + $0x20] sm:$0xff] %v1528_v39  ;;  %v1500_v45 = vmul.f32 %v2978_v24, %v1434_v22  ;;  %vm1468_vm9 = vcmp.gt.f32.partialorder %v1435_v23, 0.0  ;;  %v1501_v46 = vmul.f32 %v2978_v24, %v1435_v23  ;;  %vm1469_vm10 = vcmp.gt.f32.partialorder %v1436_v25, 0.0  ;;  %v1413_v33 = vld [vmem:[#allocation2 + $0x10] sm:$0xff] }
 0x1f7   : > { %1561 = vst [vmem:[%s2866_s7 + $0x28] sm:$0xff] %v1529_v40  ;;  %1562 = vst [vmem:[%s2866_s7 + $0x30] sm:$0xff] %v1530_v41  ;;  %v1502_v49 = vmul.f32 %v2978_v24, %v1436_v25  ;;  %vm1470_vm11 = vcmp.gt.f32.partialorder %v1437_v26, 0.0  ;;  %v1503_v50 = vmul.f32 %v2978_v24, %v1437_v26  ;;  %v1438_v53 = vadd.f32 %v2966_v2, %v1399_v43 }
 0x1f8   : > { %1563 = vst [vmem:[%s2866_s7 + $0x38] sm:$0xff] %v1531_v42  ;;  %v1532_v51 = vsel %vm1467_vm8, %v1434_v22, %v1500_v45  ;;  %v1533_v52 = vsel %vm1468_vm9, %v1435_v23, %v1501_v46  ;;  %v1439_v54 = vadd.f32 %v2966_v2, %v1400_v44  ;;  %v1440_v57 = vadd.f32 %v2966_v2, %v1401_v47  ;;  %v1415_v45 = vld [vmem:[#allocation2 + $0xa0] sm:$0xff]  ;;  %v1416_v46 = vld [vmem:[#allocation2 + $0xf8] sm:$0xff] }
 0x1f9   : > { %1564 = vst [vmem:[%s2866_s7 + $0x40] sm:$0xff] %v1532_v51  ;;  %1565 = vst [vmem:[%s2866_s7 + $0x48] sm:$0xff] %v1533_v52  ;;  %v1534_v55 = vsel %vm1469_vm10, %v1436_v25, %v1502_v49  ;;  %v1535_v56 = vsel %vm1470_vm11, %v1437_v26, %v1503_v50  ;;  %v1441_v58 = vadd.f32 %v2966_v2, %v1402_v48  ;;  %vm1471_vm12 = vcmp.gt.f32.partialorder %v1438_v53, 0.0  ;;  %v1417_v49 = vld [vmem:[#allocation2 + $0x20] sm:$0xff]  ;;  %v1418_v50 = vld [vmem:[#allocation2 + $0x98] sm:$0xff] }
 0x1fa   : > { %1566 = vst [vmem:[%s2866_s7 + $0x50] sm:$0xff] %v1534_v55  ;;  %1567 = vst [vmem:[%s2866_s7 + $0x58] sm:$0xff] %v1535_v56  ;;  %v1504_v61 = vmul.f32 %v2978_v24, %v1438_v53  ;;  %vm1472_vm13 = vcmp.gt.f32.partialorder %v1439_v54, 0.0  ;;  %v1505_v62 = vmul.f32 %v2978_v24, %v1439_v54  ;;  %vm1473_vm14 = vcmp.gt.f32.partialorder %v1440_v57, 0.0 }
 0x1fb   : > { %v1506_v1 = vmul.f32 %v2978_v24, %v1440_v57  ;;  %vm1474_vm15 = vcmp.gt.f32.partialorder %v1441_v58, 0.0  ;;  %v1507_v3 = vmul.f32 %v2978_v24, %v1441_v58  ;;  %v1442_v6 = vadd.f32 %v2966_v2, %v1403_v59 }
 0x1fc   : > { %v1536_v4 = vsel %vm1471_vm12, %v1438_v53, %v1504_v61  ;;  %v1537_v5 = vsel %vm1472_vm13, %v1439_v54, %v1505_v62  ;;  %v1443_v7 = vadd.f32 %v2966_v2, %v1404_v60  ;;  %v1444_v10 = vadd.f32 %v2966_v2, %v1405_v63 }
 0x1fd   : > { %1568 = vst [vmem:[%s2866_s7 + $0x60] sm:$0xff] %v1536_v4  ;;  %1569 = vst [vmem:[%s2866_s7 + $0x68] sm:$0xff] %v1537_v5  ;;  %v1538_v8 = vsel %vm1473_vm14, %v1440_v57, %v1506_v1  ;;  %v1539_v9 = vsel %vm1474_vm15, %v1441_v58, %v1507_v3  ;;  %v1445_v11 = vadd.f32 %v2966_v2, %v1406_v0  ;;  %vm1475_vm0 = vcmp.gt.f32.partialorder %v1442_v6, 0.0 }
 0x1fe   : > { %1570 = vst [vmem:[%s2866_s7 + $0x70] sm:$0xff] %v1538_v8  ;;  %1571 = vst [vmem:[%s2866_s7 + $0x78] sm:$0xff] %v1539_v9  ;;  %v1508_v14 = vmul.f32 %v2978_v24, %v1442_v6  ;;  %vm1476_vm1 = vcmp.gt.f32.partialorder %v1443_v7, 0.0  ;;  %v1509_v15 = vmul.f32 %v2978_v24, %v1443_v7  ;;  %vm1477_vm2 = vcmp.gt.f32.partialorder %v1444_v10, 0.0 }
 0x1ff   : > { %v1510_v18 = vmul.f32 %v2978_v24, %v1444_v10  ;;  %vm1478_vm3 = vcmp.gt.f32.partialorder %v1445_v11, 0.0  ;;  %v1511_v19 = vmul.f32 %v2978_v24, %v1445_v11  ;;  %v1446_v22 = vadd.f32 %v2966_v2, %v1407_v12 }
 0x200   : > { %v1540_v20 = vsel %vm1475_vm0, %v1442_v6, %v1508_v14  ;;  %v1541_v21 = vsel %vm1476_vm1, %v1443_v7, %v1509_v15  ;;  %v1447_v23 = vadd.f32 %v2966_v2, %v1408_v13  ;;  %v1448_v27 = vadd.f32 %v2966_v2, %v1409_v16 }
 0x201   : > { %1572 = vst [vmem:[%s2866_s7 + $0x80] sm:$0xff] %v1540_v20  ;;  %1573 = vst [vmem:[%s2866_s7 + $0x88] sm:$0xff] %v1541_v21  ;;  %v1542_v25 = vsel %vm1477_vm2, %v1444_v10, %v1510_v18  ;;  %v1543_v26 = vsel %vm1478_vm3, %v1445_v11, %v1511_v19  ;;  %v1449_v28 = vadd.f32 %v2966_v2, %v1410_v17  ;;  %vm1479_vm4 = vcmp.gt.f32.partialorder %v1446_v22, 0.0 }
 0x202   : > { %1574 = vst [vmem:[%s2866_s7 + $0x90] sm:$0xff] %v1542_v25  ;;  %1575 = vst [vmem:[%s2866_s7 + $0x98] sm:$0xff] %v1543_v26  ;;  %v1512_v31 = vmul.f32 %v2978_v24, %v1446_v22  ;;  %vm1480_vm5 = vcmp.gt.f32.partialorder %v1447_v23, 0.0  ;;  %v1513_v32 = vmul.f32 %v2978_v24, %v1447_v23  ;;  %vm1481_vm6 = vcmp.gt.f32.partialorder %v1448_v27, 0.0 }
 0x203   : > { %v1514_v35 = vmul.f32 %v2978_v24, %v1448_v27  ;;  %vm1482_vm7 = vcmp.gt.f32.partialorder %v1449_v28, 0.0  ;;  %v1515_v36 = vmul.f32 %v2978_v24, %v1449_v28  ;;  %v1450_v39 = vadd.f32 %v2966_v2, %v1411_v29 }
 0x204   : > { %v1544_v37 = vsel %vm1479_vm4, %v1446_v22, %v1512_v31  ;;  %v1545_v38 = vsel %vm1480_vm5, %v1447_v23, %v1513_v32  ;;  %v1451_v40 = vadd.f32 %v2966_v2, %v1412_v30  ;;  %v1452_v43 = vadd.f32 %v2966_v2, %v1413_v33 }
 0x205   : > { %1576 = vst [vmem:[%s2866_s7 + $0xa0] sm:$0xff] %v1544_v37  ;;  %1577 = vst [vmem:[%s2866_s7 + $0xa8] sm:$0xff] %v1545_v38  ;;  %v1546_v41 = vsel %vm1481_vm6, %v1448_v27, %v1514_v35  ;;  %v1547_v42 = vsel %vm1482_vm7, %v1449_v28, %v1515_v36  ;;  %v1453_v44 = vadd.f32 %v2966_v2, %v1414_v34  ;;  %vm1483_vm8 = vcmp.gt.f32.partialorder %v1450_v39, 0.0 }
 0x206   : > { %1578 = vst [vmem:[%s2866_s7 + $0xb0] sm:$0xff] %v1546_v41  ;;  %1579 = vst [vmem:[%s2866_s7 + $0xb8] sm:$0xff] %v1547_v42  ;;  %v1516_v47 = vmul.f32 %v2978_v24, %v1450_v39  ;;  %vm1484_vm9 = vcmp.gt.f32.partialorder %v1451_v40, 0.0  ;;  %v1517_v48 = vmul.f32 %v2978_v24, %v1451_v40  ;;  %vm1485_vm10 = vcmp.gt.f32.partialorder %v1452_v43, 0.0 }
 0x207   : > { %v1518_v51 = vmul.f32 %v2978_v24, %v1452_v43  ;;  %vm1486_vm11 = vcmp.gt.f32.partialorder %v1453_v44, 0.0  ;;  %v1519_v52 = vmul.f32 %v2978_v24, %v1453_v44  ;;  %v1454_v55 = vadd.f32 %v2966_v2, %v1415_v45 }
 0x208   : > { %v1548_v53 = vsel %vm1483_vm8, %v1450_v39, %v1516_v47  ;;  %v1549_v54 = vsel %vm1484_vm9, %v1451_v40, %v1517_v48  ;;  %v1455_v56 = vadd.f32 %v2966_v2, %v1416_v46  ;;  %v1456_v59 = vadd.f32 %v2966_v2, %v1417_v49 }
 0x209   : > { %1580 = vst [vmem:[%s2866_s7 + $0xc0] sm:$0xff] %v1548_v53  ;;  %1581 = vst [vmem:[%s2866_s7 + $0xc8] sm:$0xff] %v1549_v54  ;;  %v1550_v57 = vsel %vm1485_vm10, %v1452_v43, %v1518_v51  ;;  %v1551_v58 = vsel %vm1486_vm11, %v1453_v44, %v1519_v52  ;;  %v1457_v60 = vadd.f32 %v2966_v2, %v1418_v50  ;;  %vm1487_vm12 = vcmp.gt.f32.partialorder %v1454_v55, 0.0 }
 0x20a   : > { %1582 = vst [vmem:[%s2866_s7 + $0xd0] sm:$0xff] %v1550_v57  ;;  %1583 = vst [vmem:[%s2866_s7 + $0xd8] sm:$0xff] %v1551_v58  ;;  %v1520_v61 = vmul.f32 %v2978_v24, %v1454_v55  ;;  %vm1488_vm13 = vcmp.gt.f32.partialorder %v1455_v56, 0.0  ;;  %v1521_v62 = vmul.f32 %v2978_v24, %v1455_v56  ;;  %vm1489_vm14 = vcmp.gt.f32.partialorder %v1456_v59, 0.0 }
 0x20b   : > { %v1522_v63 = vmul.f32 %v2978_v24, %v1456_v59  ;;  %vm1490_vm15 = vcmp.gt.f32.partialorder %v1457_v60, 0.0  ;;  %v1523_v0 = vmul.f32 %v2978_v24, %v1457_v60 }
 0x20c   : > { %v1552_v1 = vsel %vm1487_vm12, %v1454_v55, %v1520_v61  ;;  %v1553_v3 = vsel %vm1488_vm13, %v1455_v56, %v1521_v62 }
 0x20d   : > { %1584 = vst [vmem:[%s2866_s7 + $0xe0] sm:$0xff] %v1552_v1  ;;  %1585 = vst [vmem:[%s2866_s7 + $0xe8] sm:$0xff] %v1553_v3  ;;  %v1554_v2 = vsel %vm1489_vm14, %v1456_v59, %v1522_v63  ;;  %v1555_v4 = vsel %vm1490_vm15, %v1457_v60, %v1523_v0 }
 0x20e   : > { %1586 = vst [vmem:[%s2866_s7 + $0xf0] sm:$0xff] %v1554_v2  ;;  %1587 = vst [vmem:[%s2866_s7 + $0xf8] sm:$0xff] %v1555_v4 }
 0x20f PF: > { %s3204_s25 = sld [smem:[#allocation17_spill]]  ;;  %s1602_s26 = sshll.u32 %s2866_s7, 4  ;;  %s3081_s26 = int_to_ptr.vmem [resolvable:$true] %s1602_s26 }
 0x210   : > { %s3205_s5 = sld [smem:[#allocation26_spill]]  ;;  %s3085_s27 = scalar_lea.sflag [#allocation6], %s281_s4 }
 0x211   : > { %s2428_s28 = scalar_lea.vmem %s3081_s26, 4096  ;;  %p3206_p1 = scmp.ne.s32.totalorder %s3194_s13, 0 }
 0x212   : > { %p2429_p11 = scmp.ne.s32.totalorder %s3081_s26, %s2428_s28  ;;  %s2591_s15 = smov [#allocation10]  }
 0x213   : > { %s2432_s6 = sshll.u32 %s2591_s15, 4  ;;  %s2433_s6 = int_to_ptr.vmem [resolvable:$false] %s2432_s6 }
 0x214   : > { %p2430_p5 = pnand %p2429_p11, %p3206_p1  ;;  %s2434_s8 = scalar_lea.vmem %s2433_s6, 8192 }
 0x215   : > { %s1843_s23 = sshll.u32 %s3204_s25, 12  ;;  %p2435_p9 = scmp.lt.s32.totalorder %s3081_s26, %s2433_s6 }
 0x216   : > { %s3078_s22 = scalar_lea.hbm %s3205_s5, %s1843_s23  ;;  %p2431_p0 = pneg %p2430_p5 }
 0x217   : > { %p2436_p8 = scmp.lt.s32.totalorder %s2434_s8, %s2428_s28 }
 0x219   : > { %p2437_p3 = por %p2436_p8, %p2435_p9 }
 0x21b   : > { %p2438_p2 = pnand %p2437_p3, %p2431_p0 }
 0x21d   : > { %2441 = shalt.err (!%p2438_p2)
}
 0x21e   : > { %s2442_s1 = scalar_lea.hbm %s3078_s22, 4096  ;;  %s2446_s20 = scalar_lea.hbm %s3205_s5, 12288 }
 0x21f   : > { %p2443_p6 = scmp.ne.s32.totalorder %s3078_s22, %s2442_s1  ;;  %p2447_p10 = scmp.lt.s32.totalorder %s3078_s22, %s3205_s5 }
 0x220   : > { %p2448_p12 = scmp.lt.s32.totalorder %s2446_s20, %s2442_s1 }
 0x221   : > { %p2444_p13 = pnand %p2443_p6, %p3206_p1 }
 0x222   : > { %p2449_p4 = por %p2448_p12, %p2447_p10 }
 0x223   : > { %p2445_p7 = pneg %p2444_p13 }
 0x225   : > { %p2450_p11 = pnand %p2449_p4, %p2445_p7 }
 0x227   : > { %2453 = shalt.err (!%p2450_p11)
}
 0x228   : > { %s2592_s11 = smov 128   ;;  %s2593_s7 = smov 8  }
 0x229   : > { %2076 = dma.vmem_to_hbm [thread:$0]  (%p3206_p1), %s3081_s26, 4096, %s3078_s22, %s3085_s27, %s2592_s11, %s2592_s11, %s2593_s7  }
 0x22a PF: > { %p2096_p5 = scmp.ge.s32.totalorder %s2580_s29, 2  ;;  %s1617_s16 = sand.u32 1, %s2528_s17  }
 0x22b   : > { %p3207_p0 = scmp.ne.s32.totalorder %s3195_s30, 0  ;;  %s1618_s25 = scalar_lea.sflag [#allocation6], %s1617_s16 }
 0x22d   : > { %p2090_p9 = pnand %p2096_p5, %p3207_p0 }
 0x22f   : > { %p2091_p8 = pneg %p2090_p9 }
 0x231   : > { %2523 = dma.done.wait (%p2091_p8), %s1618_s25, 4096  }
 0x232   : > { %2525 = vsyncadd (%p2091_p8), %s1618_s25, 4294963200  ;;  %s22_s29 = sadd.s32 1, %s2580_s29   ;;  %s3209_s13 = sld [smem:[#allocation24_spill]] }
 0x233   : > { %p3113_p3 = scmp.ge.s32.totalorder %s22_s29, 8   ;;  %s3210_s24 = sld [smem:[#allocation15_spill]] }
 0x234   : > { %s3211_s22 = sld [smem:[#allocation23_spill]]  ;;  %s3219_s17 = smov %s2532_s18 }
 0x235   : > { %s3212_s14 = sld [smem:[#allocation16_spill]]  ;;  %s3220_s18 = smov %s2536_s19 }
 0x236   : > { %s3213_s30 = sld [smem:[#allocation22_spill]]  ;;  %s3222_s20 = smov %s2544_s21 }
 0x237   : > { %s3214_s25 = sld [smem:[#allocation18_spill]]  ;;  %s3224_s23 = smov %s2556_s0 }
 0x238   : > { %s3215_s26 = sld [smem:[#allocation19_spill]]  ;;  %s3221_s19 = smov %s3209_s13 }
 0x239   : > { %s3216_s27 = sld [smem:[#allocation20_spill]]  ;;  %s3223_s21 = smov %s3210_s24 }
 0x23a   : > { %s3217_s28 = sld [smem:[#allocation21_spill]]  ;;  %21 = sbr.rel (!%p3113_p3) target bundleno = 15 (0xf), region = 104 }
 0x23b   : > { %s3225_s0 = smov %s3212_s14 }
 0x23c   : > { %s3226_s24 = smov %s3213_s30 }
 0x23f   :  { %1623 = vsyncpa [#allocation5], 1 }
 0x240   :  { %1625 = vsyncpa [#allocation5 + $0x1], 1 }
 0x241   :  { %1626 = vsyncpa [#allocation8], 1 }
 0x242   :  { %1627 = vsyncpa [#allocation6], 1 }
 0x243   :  { %1629 = vsyncpa [#allocation6 + $0x1], 1 }

</bundles_post_ra>
